<compile_context>
chip_gen: v7x
topology: tpu7x:2x2x1
jax: 0.10.0
libtpu: 0.0.40
codegen_flags: <defaults>
</compile_context>

<pallas_src>
import functools

import jax
import jax.numpy as jnp
from jax.experimental import pallas as pl
from jax.experimental.pallas import tpu as pltpu

EPS = 1e-5


def _round_up(x, m):
    return (x + m - 1) // m * m


def _largest_divisor_leq(n, target):
    for d in range(min(n, target), 0, -1):
        if n % d == 0:
            return d
    return 1


def _conv_stats_kernel(ctr_ref, top_ref, bot_ref, w_ref, conv_ref, stats_ref,
                       *, rb, w_len, cin, coutp, conv_dtype):
    """Per (batch, row-block): folded-upsample conv + per-tile BN partial sums."""
    i = pl.program_id(1)
    n_rb = pl.num_programs(1)

    xc = ctr_ref[0]                       # (rb, W+2, Cin)   center rows
    xt = top_ref[0, 0]                    # (W+2, Cin)       row above the block
    xb = bot_ref[0, 0]                    # (W+2, Cin)       row below the block

    # Halo rows come from a clamped row index; zero them at the image boundary.
    xt = jnp.where(i == 0, jnp.zeros_like(xt), xt)
    xb = jnp.where(i == n_rb - 1, jnp.zeros_like(xb), xb)

    if rb > 1:
        x_up = jnp.concatenate([xt[None], xc[:rb - 1]], axis=0)   # row r -> orig r-1
        x_dn = jnp.concatenate([xc[1:], xb[None]], axis=0)        # row r -> orig r+1
    else:
        x_up = xt[None]
        x_dn = xb[None]

    m = rb * w_len
    ch_sum = jnp.zeros((1, coutp), jnp.float32)
    ch_ssq = jnp.zeros((1, coutp), jnp.float32)
    conv_parts = []
    for p, (a, b) in enumerate(((0, 0), (0, 1), (1, 0), (1, 1))):
        s0 = x_up if a == 0 else xc        # row offset rho = 0
        s1 = xc if a == 0 else x_dn        # row offset rho = 1
        lhs = jnp.concatenate(
            [s0[:, b:b + w_len, :], s0[:, b + 1:b + 1 + w_len, :],
             s1[:, b:b + w_len, :], s1[:, b + 1:b + 1 + w_len, :]],
            axis=-1).reshape(m, 4 * cin)
        conv_p = jnp.dot(lhs, w_ref[p], preferred_element_type=jnp.float32)
        ch_sum = ch_sum + jnp.sum(conv_p, axis=0, keepdims=True)
        ch_ssq = ch_ssq + jnp.sum(conv_p * conv_p, axis=0, keepdims=True)
        conv_parts.append(conv_p.reshape(rb, w_len, coutp))

    stats_ref[0, 0] = jnp.concatenate([ch_sum, ch_ssq], axis=0)   # (2, coutp)

    # Parity -> spatial swizzle along LEADING (non-tiled) dims only: rows become
    # 2r+a, the column parity b stays its own axis, so no sublane interleave here
    # (the wrapper's single NCHW transpose absorbs the column interleave for free).
    u0 = jnp.stack([conv_parts[0], conv_parts[1]], axis=1)        # (rb, 2, W, Cp)
    u1 = jnp.stack([conv_parts[2], conv_parts[3]], axis=1)
    z = jnp.stack([u0, u1], axis=1).reshape(2 * rb, 2, w_len, coutp)
    conv_ref[0] = z.astype(conv_dtype)


def _bn_relu_kernel(conv_ref, scale_ref, shift_ref, out_ref):
    """Fused BN affine + ReLU: out = max(conv * scale + shift, 0)."""
    x = conv_ref[0].astype(jnp.float32)
    out_ref[0] = jnp.maximum(x * scale_ref[...] + shift_ref[...], 0.0)


@functools.partial(jax.jit, static_argnames=("rb_target", "use_bf16"))
def upblock2d_forward(x_nchw, weight, bias, gamma, beta, *, rb_target=8,
                      use_bf16=True):
    """x_nchw: (N,Cin,H,W); weight: (Cout,Cin,3,3); bias/gamma/beta: (Cout,)."""
    N, Cin, H, W = x_nchw.shape
    Cout, Cin_w, kh, kw = weight.shape
    assert (kh, kw) == (3, 3) and Cin_w == Cin, "only k=3, p=1, groups=1 supported"
    del bias  # conv bias is cancelled exactly by training-mode BatchNorm.

    RB = _largest_divisor_leq(H, rb_target)   # rows of the ORIGINAL image per step
    nRB = H // RB
    Wp = W + 2
    Coutp = _round_up(Cout, 128)              # lane-dense channel width
    in_dtype = jnp.bfloat16 if use_bf16 else jnp.float32
    conv_dtype = jnp.bfloat16 if use_bf16 else jnp.float32

    # --- glue: NHWC, padded by one column each side; rows get their halo from the
    # neighbouring row blocks inside pass 1 (no 9x im2col ever hits HBM).
    x = jnp.transpose(x_nchw, (0, 2, 3, 1))
    x_wpad = jnp.pad(x, ((0, 0), (0, 0), (1, 1), (0, 0))).astype(in_dtype)

    # --- glue: fold nearest-x2 upsample + 3x3 conv into four per-parity 2x2 convs
    # on the original image.  K ordering matches the kernel's LHS concat:
    # (rho, sigma) = (0,0), (0,1), (1,0), (1,1), each block Cin wide.
    w_hwio = jnp.transpose(weight, (2, 3, 1, 0)).astype(jnp.float32)  # (3,3,Cin,Cout)
    w_par = []
    for a in range(2):
        for b in range(2):
            blocks = []
            for rho in range(2):
                for sig in range(2):
                    wb = jnp.zeros((Cin, Cout), jnp.float32)
                    for dh in range(3):
                        for dw in range(3):
                            if ((a + dh + 1) // 2 - a == rho
                                    and (b + dw + 1) // 2 - b == sig):
                                wb = wb + w_hwio[dh, dw]
                    blocks.append(wb)
            w_par.append(jnp.concatenate(blocks, axis=0))            # (4*Cin, Cout)
    w_all = jnp.stack(w_par, axis=0)                                  # (4,4*Cin,Cout)
    w_all = jnp.pad(w_all, ((0, 0), (0, 0), (0, Coutp - Cout))).astype(in_dtype)

    # --- VMEM budget: per-step working set with 2x headroom, clamped to 64 MiB
    # so it is valid on v7x (64 MiB/TC) while still >= the v5e/v6e scoped default.
    dt_in = 2 if use_bf16 else 4
    dt_cv = 2 if use_bf16 else 4
    M = RB * W
    est = (2 * RB * Wp * Cin * dt_in          # center block (double-buffered)
           + 4 * Wp * Cin * dt_in             # halo rows
           + 2 * 4 * 4 * Cin * Coutp * dt_in  # resident weights
           + 2 * 2 * RB * 2 * W * Coutp * dt_cv  # conv output block
           + 2 * RB * Wp * Cin * dt_in        # x_up / x_dn temporaries
           + M * 4 * Cin * dt_in              # one parity LHS
           + 5 * M * Coutp * 4                # f32 conv_p temporaries + swizzle
           + 4 * 2 * Coutp * 4)               # stats
    vmem_limit = int(min(max(2 * est, 32 * 2**20), 64 * 2**20))

    grid = (N, nRB)

    # --- pass 1: folded-upsample conv + per-tile BN partial sums (fully parallel).
    conv5d, stats = pl.pallas_call(
        functools.partial(_conv_stats_kernel, rb=RB, w_len=W, cin=Cin,
                          coutp=Coutp, conv_dtype=conv_dtype),
        out_shape=(
            jax.ShapeDtypeStruct((N, 2 * H, 2, W, Coutp), conv_dtype),
            jax.ShapeDtypeStruct((N, nRB, 2, Coutp), jnp.float32),
        ),
        grid=grid,
        in_specs=[
            pl.BlockSpec((1, RB, Wp, Cin), lambda n, i: (n, i, 0, 0)),
            pl.BlockSpec((1, 1, Wp, Cin),
                         lambda n, i: (n, jnp.maximum(i * RB - 1, 0), 0, 0)),
            pl.BlockSpec((1, 1, Wp, Cin),
                         lambda n, i: (n, jnp.minimum(i * RB + RB, H - 1), 0, 0)),
            pl.BlockSpec((4, 4 * Cin, Coutp), lambda n, i: (0, 0, 0)),
        ],
        out_specs=(
            pl.BlockSpec((1, 2 * RB, 2, W, Coutp), lambda n, i: (n, i, 0, 0, 0)),
            pl.BlockSpec((1, 1, 2, Coutp), lambda n, i: (n, i, 0, 0)),
        ),
        compiler_params=pltpu.CompilerParams(
            dimension_semantics=("parallel", "parallel"),
            vmem_limit_bytes=vmem_limit),
    )(x_wpad, x_wpad, x_wpad, w_all)

    # --- glue: finalize batch-norm statistics (tiny, per channel, f32).
    count = jnp.float32(N * 2 * H * 2 * W)
    ch_sum = jnp.sum(stats[:, :, 0, :Cout], axis=(0, 1))
    ch_ssq = jnp.sum(stats[:, :, 1, :Cout], axis=(0, 1))
    mean = ch_sum / count
    var = jnp.maximum(ch_ssq / count - mean * mean, 0.0)
    inv_std = jax.lax.rsqrt(var + EPS)
    scale_c = gamma.astype(jnp.float32) * inv_std
    shift_c = beta.astype(jnp.float32) - mean * scale_c
    scale = jnp.pad(scale_c, (0, Coutp - Cout)).reshape(1, Coutp)
    shift = jnp.pad(shift_c, (0, Coutp - Cout)).reshape(1, Coutp)

    # --- pass 2: fused normalize + affine + ReLU, lane-dense streaming.
    out5d = pl.pallas_call(
        _bn_relu_kernel,
        out_shape=jax.ShapeDtypeStruct((N, 2 * H, 2, W, Coutp), jnp.float32),
        grid=grid,
        in_specs=[
            pl.BlockSpec((1, 2 * RB, 2, W, Coutp), lambda n, i: (n, i, 0, 0, 0)),
            pl.BlockSpec((1, Coutp), lambda n, i: (0, 0)),
            pl.BlockSpec((1, Coutp), lambda n, i: (0, 0)),
        ],
        out_specs=pl.BlockSpec((1, 2 * RB, 2, W, Coutp),
                               lambda n, i: (n, i, 0, 0, 0)),
        compiler_params=pltpu.CompilerParams(
            dimension_semantics=("parallel", "parallel"),
            vmem_limit_bytes=vmem_limit),
    )(conv5d, scale, shift)

    # --- glue: one transpose to NCHW; it also performs the column-parity
    # interleave (2j+b), so no extra spatial unpack round trip is needed.
    # TODO(synk): for NHWC consumers return
    #   jnp.transpose(out5d[..., :Cout], (0,1,3,2,4)).reshape(N, 2*H, 2*W, Cout)
    # and skip the NCHW materialization entirely.
    y = out5d[:, :, :, :, :Cout]                                  # (N, 2H, 2, W, C)
    y = jnp.transpose(y, (0, 4, 1, 3, 2)).reshape(N, Cout, 2 * H, 2 * W)
    return y


def reference_forward(x_nchw, weight, bias, gamma, beta):
    """Pure-JAX reference mirroring the PyTorch module (training-mode BN)."""
    x = jnp.repeat(jnp.repeat(x_nchw, 2, axis=2), 2, axis=3)
    conv = jax.lax.conv_general_dilated(
        x, weight, window_strides=(1, 1), padding=((1, 1), (1, 1)),
        dimension_numbers=("NCHW", "OIHW", "NCHW"))
    conv = conv + bias[None, :, None, None]
    mean = conv.mean(axis=(0, 2, 3), keepdims=True)
    var = ((conv - mean) ** 2).mean(axis=(0, 2, 3), keepdims=True)
    y = (conv - mean) / jnp.sqrt(var + EPS)
    y = y * gamma[None, :, None, None] + beta[None, :, None, None]
    return jnp.maximum(y, 0.0)


if __name__ == "__main__":
    N, Cin, H, W = 2, 4, 16, 16
    Cout = 8

    key = jax.random.PRNGKey(0)
    kx, kw_, kb, kg, kbe = jax.random.split(key, 5)

    x = jax.random.normal(kx, (N, Cin, H, W), dtype=jnp.float32)
    weight = 0.1 * jax.random.normal(kw_, (Cout, Cin, 3, 3), dtype=jnp.float32)
    bias = 0.05 * jax.random.normal(kb, (Cout,), dtype=jnp.float32)
    gamma = 1.0 + 0.1 * jax.random.normal(kg, (Cout,), dtype=jnp.float32)
    beta = 0.1 * jax.random.normal(kbe, (Cout,), dtype=jnp.float32)

    ref = reference_forward(x, weight, bias, gamma, beta)

    # f32 path, RB=8 -> 2 row blocks per image: exercises the halo exchange and
    # the boundary masking at both ends.
    out_f32 = jax.block_until_ready(
        upblock2d_forward(x, weight, bias, gamma, beta, rb_target=8,
                          use_bf16=False))
    assert out_f32.shape == (N, Cout, 2 * H, 2 * W), out_f32.shape
    err = float(jnp.max(jnp.abs(out_f32 - ref)))
    assert jnp.allclose(out_f32, ref, atol=2e-3, rtol=2e-3), err

    # default bf16 streaming path (MXU inputs + conv intermediate in bf16),
    # RB=4 -> 4 row blocks: exercises interior blocks with halos on both sides.
    out_bf16 = jax.block_until_ready(
        upblock2d_forward(x, weight, bias, gamma, beta, rb_target=4,
                          use_bf16=True))
    err_bf16 = float(jnp.max(jnp.abs(out_bf16 - ref)))
    assert jnp.allclose(out_bf16, ref, atol=8e-2, rtol=2e-2), err_bf16

    print("KERNEL_OK")
</pallas_src>

<mosaic_0001>
module attributes {stable_mosaic.version = 11 : i64} {
  func.func @_conv_stats_kernel(%arg0: i32, %arg1: i32, %arg2: memref<1x8x18x4xf32, #tpu.memory_space<vmem>>, %arg3: memref<1x1x18x4xf32, #tpu.memory_space<vmem>>, %arg4: memref<1x1x18x4xf32, #tpu.memory_space<vmem>>, %arg5: memref<4x16x128xf32, #tpu.memory_space<vmem>>, %arg6: memref<1x16x2x16x128xf32, #tpu.memory_space<vmem>>, %arg7: memref<1x1x2x128xf32, #tpu.memory_space<vmem>>) attributes {dimension_semantics = [#tpu.dimension_semantics<parallel>, #tpu.dimension_semantics<parallel>], iteration_bounds = array<i64: 2, 2>, scalar_prefetch = 0 : i64, scratch_operands = 0 : i64, tpu.core_type = #tpu.core_type<tc>, window_params = [{transform_indices = @transform_0, window_bounds = array<i64: 1, 8, 18, 4>}, {transform_indices = @transform_1, window_bounds = array<i64: 1, 1, 18, 4>}, {transform_indices = @transform_2, window_bounds = array<i64: 1, 1, 18, 4>}, {pipeline_mode = #tpu.pipeline_mode<synchronous>, transform_indices = @transform_3, window_bounds = array<i64: 4, 16, 128>}, {transform_indices = @transform_4, window_bounds = array<i64: 1, 16, 2, 16, 128>}, {transform_indices = @transform_5, window_bounds = array<i64: 1, 1, 2, 128>}]} {
    %c0 = arith.constant 0 : index
    %c0_0 = arith.constant 0 : index
    %c0_1 = arith.constant 0 : index
    %c0_2 = arith.constant 0 : index
    %0 = vector.load %arg2[%c0, %c0_0, %c0_1, %c0_2] : memref<1x8x18x4xf32, #tpu.memory_space<vmem>>, vector<1x8x18x4xf32>
    %1 = vector.shape_cast %0 : vector<1x8x18x4xf32> to vector<8x18x4xf32>
    %c0_3 = arith.constant 0 : index
    %c0_4 = arith.constant 0 : index
    %c0_5 = arith.constant 0 : index
    %c0_6 = arith.constant 0 : index
    %2 = vector.load %arg3[%c0_3, %c0_4, %c0_5, %c0_6] : memref<1x1x18x4xf32, #tpu.memory_space<vmem>>, vector<1x1x18x4xf32>
    %3 = vector.shape_cast %2 : vector<1x1x18x4xf32> to vector<18x4xf32>
    %c0_7 = arith.constant 0 : index
    %c0_8 = arith.constant 0 : index
    %c0_9 = arith.constant 0 : index
    %c0_10 = arith.constant 0 : index
    %4 = vector.load %arg4[%c0_7, %c0_8, %c0_9, %c0_10] : memref<1x1x18x4xf32, #tpu.memory_space<vmem>>, vector<1x1x18x4xf32>
    %5 = vector.shape_cast %4 : vector<1x1x18x4xf32> to vector<18x4xf32>
    %c0_i32 = arith.constant 0 : i32
    %6 = arith.cmpi eq, %arg1, %c0_i32 : i32
    %cst = arith.constant 0.000000e+00 : f32
    %7 = vector.broadcast %cst : f32 to vector<18x4xf32>
    %8 = arith.select %6, %7, %3 : vector<18x4xf32>
    %c1_i32 = arith.constant 1 : i32
    %9 = arith.cmpi eq, %arg1, %c1_i32 : i32
    %cst_11 = arith.constant 0.000000e+00 : f32
    %10 = vector.broadcast %cst_11 : f32 to vector<18x4xf32>
    %11 = arith.select %9, %10, %5 : vector<18x4xf32>
    %12 = vector.shape_cast %8 : vector<18x4xf32> to vector<1x18x4xf32>
    %13 = vector.extract_strided_slice %1 {offsets = [0, 0, 0], sizes = [7, 18, 4], strides = [1, 1, 1]} : vector<8x18x4xf32> to vector<7x18x4xf32>
    %14 = tpu.concatenate %12, %13 in 0 : vector<1x18x4xf32>, vector<7x18x4xf32> -> vector<8x18x4xf32>
    %15 = vector.extract_strided_slice %1 {offsets = [1, 0, 0], sizes = [7, 18, 4], strides = [1, 1, 1]} : vector<8x18x4xf32> to vector<7x18x4xf32>
    %16 = vector.shape_cast %11 : vector<18x4xf32> to vector<1x18x4xf32>
    %17 = tpu.concatenate %15, %16 in 0 : vector<7x18x4xf32>, vector<1x18x4xf32> -> vector<8x18x4xf32>
    %cst_12 = arith.constant 0.000000e+00 : f32
    %18 = vector.broadcast %cst_12 : f32 to vector<1x128xf32>
    %cst_13 = arith.constant 0.000000e+00 : f32
    %19 = vector.broadcast %cst_13 : f32 to vector<1x128xf32>
    %20 = vector.extract_strided_slice %14 {offsets = [0, 0, 0], sizes = [8, 16, 4], strides = [1, 1, 1]} : vector<8x18x4xf32> to vector<8x16x4xf32>
    %21 = vector.extract_strided_slice %14 {offsets = [0, 1, 0], sizes = [8, 16, 4], strides = [1, 1, 1]} : vector<8x18x4xf32> to vector<8x16x4xf32>
    %22 = vector.extract_strided_slice %1 {offsets = [0, 0, 0], sizes = [8, 16, 4], strides = [1, 1, 1]} : vector<8x18x4xf32> to vector<8x16x4xf32>
    %23 = vector.extract_strided_slice %1 {offsets = [0, 1, 0], sizes = [8, 16, 4], strides = [1, 1, 1]} : vector<8x18x4xf32> to vector<8x16x4xf32>
    %24 = tpu.concatenate %20, %21, %22, %23 in 2 : vector<8x16x4xf32>, vector<8x16x4xf32>, vector<8x16x4xf32>, vector<8x16x4xf32> -> vector<8x16x16xf32>
    %25 = vector.shape_cast %24 : vector<8x16x16xf32> to vector<128x16xf32>
    %c0_14 = arith.constant 0 : index
    %c0_15 = arith.constant 0 : index
    %c0_16 = arith.constant 0 : index
    %26 = vector.load %arg5[%c0_14, %c0_15, %c0_16] : memref<4x16x128xf32, #tpu.memory_space<vmem>>, vector<1x16x128xf32>
    %27 = vector.shape_cast %26 : vector<1x16x128xf32> to vector<16x128xf32>
    %cst_17 = arith.constant dense<0.000000e+00> : vector<128x128xf32>
    %28 = tpu.matmul %25, %27, %cst_17 {dimension_numbers = #tpu.dot_dimension_numbers<[1], [0], [0], [1], [0, 0, 1, 1], [], []>} : vector<128x16xf32>, vector<16x128xf32>, vector<128x128xf32> -> vector<128x128xf32>
    %cst_18 = arith.constant dense<0.000000e+00> : vector<128xf32>
    %29 = vector.multi_reduction <add>, %28, %cst_18 [0] : vector<128x128xf32> to vector<128xf32>
    %30 = vector.shape_cast %29 : vector<128xf32> to vector<1x128xf32>
    %31 = arith.addf %18, %30 : vector<1x128xf32>
    %32 = arith.mulf %28, %28 : vector<128x128xf32>
    %cst_19 = arith.constant dense<0.000000e+00> : vector<128xf32>
    %33 = vector.multi_reduction <add>, %32, %cst_19 [0] : vector<128x128xf32> to vector<128xf32>
    %34 = vector.shape_cast %33 : vector<128xf32> to vector<1x128xf32>
    %35 = arith.addf %19, %34 : vector<1x128xf32>
    %36 = vector.shape_cast %28 : vector<128x128xf32> to vector<8x16x128xf32>
    %37 = vector.extract_strided_slice %14 {offsets = [0, 1, 0], sizes = [8, 16, 4], strides = [1, 1, 1]} : vector<8x18x4xf32> to vector<8x16x4xf32>
    %38 = vector.extract_strided_slice %14 {offsets = [0, 2, 0], sizes = [8, 16, 4], strides = [1, 1, 1]} : vector<8x18x4xf32> to vector<8x16x4xf32>
    %39 = vector.extract_strided_slice %1 {offsets = [0, 1, 0], sizes = [8, 16, 4], strides = [1, 1, 1]} : vector<8x18x4xf32> to vector<8x16x4xf32>
    %40 = vector.extract_strided_slice %1 {offsets = [0, 2, 0], sizes = [8, 16, 4], strides = [1, 1, 1]} : vector<8x18x4xf32> to vector<8x16x4xf32>
    %41 = tpu.concatenate %37, %38, %39, %40 in 2 : vector<8x16x4xf32>, vector<8x16x4xf32>, vector<8x16x4xf32>, vector<8x16x4xf32> -> vector<8x16x16xf32>
    %42 = vector.shape_cast %41 : vector<8x16x16xf32> to vector<128x16xf32>
    %c1 = arith.constant 1 : index
    %c0_20 = arith.constant 0 : index
    %c0_21 = arith.constant 0 : index
    %43 = vector.load %arg5[%c1, %c0_20, %c0_21] : memref<4x16x128xf32, #tpu.memory_space<vmem>>, vector<1x16x128xf32>
    %44 = vector.shape_cast %43 : vector<1x16x128xf32> to vector<16x128xf32>
    %cst_22 = arith.constant dense<0.000000e+00> : vector<128x128xf32>
    %45 = tpu.matmul %42, %44, %cst_22 {dimension_numbers = #tpu.dot_dimension_numbers<[1], [0], [0], [1], [0, 0, 1, 1], [], []>} : vector<128x16xf32>, vector<16x128xf32>, vector<128x128xf32> -> vector<128x128xf32>
    %cst_23 = arith.constant dense<0.000000e+00> : vector<128xf32>
    %46 = vector.multi_reduction <add>, %45, %cst_23 [0] : vector<128x128xf32> to vector<128xf32>
    %47 = vector.shape_cast %46 : vector<128xf32> to vector<1x128xf32>
    %48 = arith.addf %31, %47 : vector<1x128xf32>
    %49 = arith.mulf %45, %45 : vector<128x128xf32>
    %cst_24 = arith.constant dense<0.000000e+00> : vector<128xf32>
    %50 = vector.multi_reduction <add>, %49, %cst_24 [0] : vector<128x128xf32> to vector<128xf32>
    %51 = vector.shape_cast %50 : vector<128xf32> to vector<1x128xf32>
    %52 = arith.addf %35, %51 : vector<1x128xf32>
    %53 = vector.shape_cast %45 : vector<128x128xf32> to vector<8x16x128xf32>
    %54 = vector.extract_strided_slice %1 {offsets = [0, 0, 0], sizes = [8, 16, 4], strides = [1, 1, 1]} : vector<8x18x4xf32> to vector<8x16x4xf32>
    %55 = vector.extract_strided_slice %1 {offsets = [0, 1, 0], sizes = [8, 16, 4], strides = [1, 1, 1]} : vector<8x18x4xf32> to vector<8x16x4xf32>
    %56 = vector.extract_strided_slice %17 {offsets = [0, 0, 0], sizes = [8, 16, 4], strides = [1, 1, 1]} : vector<8x18x4xf32> to vector<8x16x4xf32>
    %57 = vector.extract_strided_slice %17 {offsets = [0, 1, 0], sizes = [8, 16, 4], strides = [1, 1, 1]} : vector<8x18x4xf32> to vector<8x16x4xf32>
    %58 = tpu.concatenate %54, %55, %56, %57 in 2 : vector<8x16x4xf32>, vector<8x16x4xf32>, vector<8x16x4xf32>, vector<8x16x4xf32> -> vector<8x16x16xf32>
    %59 = vector.shape_cast %58 : vector<8x16x16xf32> to vector<128x16xf32>
    %c2 = arith.constant 2 : index
    %c0_25 = arith.constant 0 : index
    %c0_26 = arith.constant 0 : index
    %60 = vector.load %arg5[%c2, %c0_25, %c0_26] : memref<4x16x128xf32, #tpu.memory_space<vmem>>, vector<1x16x128xf32>
    %61 = vector.shape_cast %60 : vector<1x16x128xf32> to vector<16x128xf32>
    %cst_27 = arith.constant dense<0.000000e+00> : vector<128x128xf32>
    %62 = tpu.matmul %59, %61, %cst_27 {dimension_numbers = #tpu.dot_dimension_numbers<[1], [0], [0], [1], [0, 0, 1, 1], [], []>} : vector<128x16xf32>, vector<16x128xf32>, vector<128x128xf32> -> vector<128x128xf32>
    %cst_28 = arith.constant dense<0.000000e+00> : vector<128xf32>
    %63 = vector.multi_reduction <add>, %62, %cst_28 [0] : vector<128x128xf32> to vector<128xf32>
    %64 = vector.shape_cast %63 : vector<128xf32> to vector<1x128xf32>
    %65 = arith.addf %48, %64 : vector<1x128xf32>
    %66 = arith.mulf %62, %62 : vector<128x128xf32>
    %cst_29 = arith.constant dense<0.000000e+00> : vector<128xf32>
    %67 = vector.multi_reduction <add>, %66, %cst_29 [0] : vector<128x128xf32> to vector<128xf32>
    %68 = vector.shape_cast %67 : vector<128xf32> to vector<1x128xf32>
    %69 = arith.addf %52, %68 : vector<1x128xf32>
    %70 = vector.shape_cast %62 : vector<128x128xf32> to vector<8x16x128xf32>
    %71 = vector.extract_strided_slice %1 {offsets = [0, 1, 0], sizes = [8, 16, 4], strides = [1, 1, 1]} : vector<8x18x4xf32> to vector<8x16x4xf32>
    %72 = vector.extract_strided_slice %1 {offsets = [0, 2, 0], sizes = [8, 16, 4], strides = [1, 1, 1]} : vector<8x18x4xf32> to vector<8x16x4xf32>
    %73 = vector.extract_strided_slice %17 {offsets = [0, 1, 0], sizes = [8, 16, 4], strides = [1, 1, 1]} : vector<8x18x4xf32> to vector<8x16x4xf32>
    %74 = vector.extract_strided_slice %17 {offsets = [0, 2, 0], sizes = [8, 16, 4], strides = [1, 1, 1]} : vector<8x18x4xf32> to vector<8x16x4xf32>
    %75 = tpu.concatenate %71, %72, %73, %74 in 2 : vector<8x16x4xf32>, vector<8x16x4xf32>, vector<8x16x4xf32>, vector<8x16x4xf32> -> vector<8x16x16xf32>
    %76 = vector.shape_cast %75 : vector<8x16x16xf32> to vector<128x16xf32>
    %c3 = arith.constant 3 : index
    %c0_30 = arith.constant 0 : index
    %c0_31 = arith.constant 0 : index
    %77 = vector.load %arg5[%c3, %c0_30, %c0_31] : memref<4x16x128xf32, #tpu.memory_space<vmem>>, vector<1x16x128xf32>
    %78 = vector.shape_cast %77 : vector<1x16x128xf32> to vector<16x128xf32>
    %cst_32 = arith.constant dense<0.000000e+00> : vector<128x128xf32>
    %79 = tpu.matmul %76, %78, %cst_32 {dimension_numbers = #tpu.dot_dimension_numbers<[1], [0], [0], [1], [0, 0, 1, 1], [], []>} : vector<128x16xf32>, vector<16x128xf32>, vector<128x128xf32> -> vector<128x128xf32>
    %cst_33 = arith.constant dense<0.000000e+00> : vector<128xf32>
    %80 = vector.multi_reduction <add>, %79, %cst_33 [0] : vector<128x128xf32> to vector<128xf32>
    %81 = vector.shape_cast %80 : vector<128xf32> to vector<1x128xf32>
    %82 = arith.addf %65, %81 : vector<1x128xf32>
    %83 = arith.mulf %79, %79 : vector<128x128xf32>
    %cst_34 = arith.constant dense<0.000000e+00> : vector<128xf32>
    %84 = vector.multi_reduction <add>, %83, %cst_34 [0] : vector<128x128xf32> to vector<128xf32>
    %85 = vector.shape_cast %84 : vector<128xf32> to vector<1x128xf32>
    %86 = arith.addf %69, %85 : vector<1x128xf32>
    %87 = vector.shape_cast %79 : vector<128x128xf32> to vector<8x16x128xf32>
    %88 = tpu.concatenate %82, %86 in 0 : vector<1x128xf32>, vector<1x128xf32> -> vector<2x128xf32>
    %c0_35 = arith.constant 0 : index
    %c0_36 = arith.constant 0 : index
    %c0_37 = arith.constant 0 : index
    %c0_38 = arith.constant 0 : index
    %89 = vector.load %arg7[%c0_35, %c0_36, %c0_37, %c0_38] : memref<1x1x2x128xf32, #tpu.memory_space<vmem>>, vector<1x1x2x128xf32>
    %90 = vector.shape_cast %89 : vector<1x1x2x128xf32> to vector<2x128xf32>
    %91 = vector.shape_cast %88 : vector<2x128xf32> to vector<1x1x2x128xf32>
    tpu.vector_store %arg7[%c0_35, %c0_36, %c0_37, %c0_38], %91 {strides = array<i32>} : memref<1x1x2x128xf32, #tpu.memory_space<vmem>>, vector<1x1x2x128xf32>,
    %92 = vector.shape_cast %36 : vector<8x16x128xf32> to vector<8x1x16x128xf32>
    %93 = vector.shape_cast %53 : vector<8x16x128xf32> to vector<8x1x16x128xf32>
    %94 = tpu.concatenate %92, %93 in 1 : vector<8x1x16x128xf32>, vector<8x1x16x128xf32> -> vector<8x2x16x128xf32>
    %95 = vector.shape_cast %70 : vector<8x16x128xf32> to vector<8x1x16x128xf32>
    %96 = vector.shape_cast %87 : vector<8x16x128xf32> to vector<8x1x16x128xf32>
    %97 = tpu.concatenate %95, %96 in 1 : vector<8x1x16x128xf32>, vector<8x1x16x128xf32> -> vector<8x2x16x128xf32>
    %98 = vector.shape_cast %94 : vector<8x2x16x128xf32> to vector<8x1x2x16x128xf32>
    %99 = vector.shape_cast %97 : vector<8x2x16x128xf32> to vector<8x1x2x16x128xf32>
    %100 = tpu.concatenate %98, %99 in 1 : vector<8x1x2x16x128xf32>, vector<8x1x2x16x128xf32> -> vector<8x2x2x16x128xf32>
    %101 = vector.shape_cast %100 : vector<8x2x2x16x128xf32> to vector<16x2x16x128xf32>
    %c0_39 = arith.constant 0 : index
    %c0_40 = arith.constant 0 : index
    %c0_41 = arith.constant 0 : index
    %c0_42 = arith.constant 0 : index
    %c0_43 = arith.constant 0 : index
    %102 = vector.load %arg6[%c0_39, %c0_40, %c0_41, %c0_42, %c0_43] : memref<1x16x2x16x128xf32, #tpu.memory_space<vmem>>, vector<1x16x2x16x128xf32>
    %103 = vector.shape_cast %102 : vector<1x16x2x16x128xf32> to vector<16x2x16x128xf32>
    %104 = vector.shape_cast %101 : vector<16x2x16x128xf32> to vector<1x16x2x16x128xf32>
    tpu.vector_store %arg6[%c0_39, %c0_40, %c0_41, %c0_42, %c0_43], %104 {strides = array<i32>} : memref<1x16x2x16x128xf32, #tpu.memory_space<vmem>>, vector<1x16x2x16x128xf32>,
    return
  }
  func.func @transform_0(%arg0: i32, %arg1: i32) -> (i32, i32, i32, i32) {
    %c0_i32 = arith.constant 0 : i32
    %c0_i32_0 = arith.constant 0 : i32
    %c0_i32_1 = arith.constant 0 : i32
    return %arg0, %arg1, %c0_i32, %c0_i32_0 : i32, i32, i32, i32
  }
  func.func @transform_1(%arg0: i32, %arg1: i32) -> (i32, i32, i32, i32) {
    %c8_i32 = arith.constant 8 : i32
    %0 = arith.muli %arg1, %c8_i32 : i32
    %c1_i32 = arith.constant 1 : i32
    %1 = arith.subi %0, %c1_i32 : i32
    %c0_i32 = arith.constant 0 : i32
    %2 = arith.maxsi %1, %c0_i32 : i32
    %c0_i32_0 = arith.constant 0 : i32
    %c0_i32_1 = arith.constant 0 : i32
    %c0_i32_2 = arith.constant 0 : i32
    return %arg0, %2, %c0_i32_0, %c0_i32_1 : i32, i32, i32, i32
  }
  func.func @transform_2(%arg0: i32, %arg1: i32) -> (i32, i32, i32, i32) {
    %c8_i32 = arith.constant 8 : i32
    %0 = arith.muli %arg1, %c8_i32 : i32
    %c8_i32_0 = arith.constant 8 : i32
    %1 = arith.addi %0, %c8_i32_0 : i32
    %c15_i32 = arith.constant 15 : i32
    %2 = arith.minsi %1, %c15_i32 : i32
    %c0_i32 = arith.constant 0 : i32
    %c0_i32_1 = arith.constant 0 : i32
    %c0_i32_2 = arith.constant 0 : i32
    return %arg0, %2, %c0_i32, %c0_i32_1 : i32, i32, i32, i32
  }
  func.func @transform_3(%arg0: i32, %arg1: i32) -> (i32, i32, i32) {
    %c0_i32 = arith.constant 0 : i32
    %c0_i32_0 = arith.constant 0 : i32
    %c0_i32_1 = arith.constant 0 : i32
    %c0_i32_2 = arith.constant 0 : i32
    return %c0_i32, %c0_i32_0, %c0_i32_1 : i32, i32, i32
  }
  func.func @transform_4(%arg0: i32, %arg1: i32) -> (i32, i32, i32, i32, i32) {
    %c0_i32 = arith.constant 0 : i32
    %c0_i32_0 = arith.constant 0 : i32
    %c0_i32_1 = arith.constant 0 : i32
    %c0_i32_2 = arith.constant 0 : i32
    return %arg0, %arg1, %c0_i32, %c0_i32_0, %c0_i32_1 : i32, i32, i32, i32, i32
  }
  func.func @transform_5(%arg0: i32, %arg1: i32) -> (i32, i32, i32, i32) {
    %c0_i32 = arith.constant 0 : i32
    %c0_i32_0 = arith.constant 0 : i32
    %c0_i32_1 = arith.constant 0 : i32
    return %arg0, %arg1, %c0_i32, %c0_i32_0 : i32, i32, i32, i32
  }
}

module attributes {stable_mosaic.version = 11 : i64} {
  func.func @_bn_relu_kernel(%arg0: i32, %arg1: i32, %arg2: memref<1x16x2x16x128xf32, #tpu.memory_space<vmem>>, %arg3: memref<1x128xf32, #tpu.memory_space<vmem>>, %arg4: memref<1x128xf32, #tpu.memory_space<vmem>>, %arg5: memref<1x16x2x16x128xf32, #tpu.memory_space<vmem>>) attributes {dimension_semantics = [#tpu.dimension_semantics<parallel>, #tpu.dimension_semantics<parallel>], iteration_bounds = array<i64: 2, 2>, scalar_prefetch = 0 : i64, scratch_operands = 0 : i64, tpu.core_type = #tpu.core_type<tc>, window_params = [{transform_indices = @transform_0, window_bounds = array<i64: 1, 16, 2, 16, 128>}, {pipeline_mode = #tpu.pipeline_mode<synchronous>, transform_indices = @transform_1, window_bounds = array<i64: 1, 128>}, {pipeline_mode = #tpu.pipeline_mode<synchronous>, transform_indices = @transform_2, window_bounds = array<i64: 1, 128>}, {transform_indices = @transform_3, window_bounds = array<i64: 1, 16, 2, 16, 128>}]} {
    %c0 = arith.constant 0 : index
    %c0_0 = arith.constant 0 : index
    %c0_1 = arith.constant 0 : index
    %c0_2 = arith.constant 0 : index
    %c0_3 = arith.constant 0 : index
    %0 = vector.load %arg2[%c0, %c0_0, %c0_1, %c0_2, %c0_3] : memref<1x16x2x16x128xf32, #tpu.memory_space<vmem>>, vector<1x16x2x16x128xf32>
    %1 = vector.shape_cast %0 : vector<1x16x2x16x128xf32> to vector<16x2x16x128xf32>
    %c0_4 = arith.constant 0 : index
    %c0_5 = arith.constant 0 : index
    %2 = vector.load %arg3[%c0_4, %c0_5] : memref<1x128xf32, #tpu.memory_space<vmem>>, vector<1x128xf32>
    %3 = vector.shape_cast %2 : vector<1x128xf32> to vector<1x1x1x128xf32>
    %4 = vector.broadcast %3 : vector<1x1x1x128xf32> to vector<16x2x16x128xf32>
    %5 = arith.mulf %1, %4 : vector<16x2x16x128xf32>
    %c0_6 = arith.constant 0 : index
    %c0_7 = arith.constant 0 : index
    %6 = vector.load %arg4[%c0_6, %c0_7] : memref<1x128xf32, #tpu.memory_space<vmem>>, vector<1x128xf32>
    %7 = vector.shape_cast %6 : vector<1x128xf32> to vector<1x1x1x128xf32>
    %8 = vector.broadcast %7 : vector<1x1x1x128xf32> to vector<16x2x16x128xf32>
    %9 = arith.addf %5, %8 : vector<16x2x16x128xf32>
    %cst = arith.constant 0.000000e+00 : f32
    %10 = vector.broadcast %cst : f32 to vector<16x2x16x128xf32>
    %11 = arith.maximumf %9, %10 : vector<16x2x16x128xf32>
    %c0_8 = arith.constant 0 : index
    %c0_9 = arith.constant 0 : index
    %c0_10 = arith.constant 0 : index
    %c0_11 = arith.constant 0 : index
    %c0_12 = arith.constant 0 : index
    %12 = vector.load %arg5[%c0_8, %c0_9, %c0_10, %c0_11, %c0_12] : memref<1x16x2x16x128xf32, #tpu.memory_space<vmem>>, vector<1x16x2x16x128xf32>
    %13 = vector.shape_cast %12 : vector<1x16x2x16x128xf32> to vector<16x2x16x128xf32>
    %14 = vector.shape_cast %11 : vector<16x2x16x128xf32> to vector<1x16x2x16x128xf32>
    tpu.vector_store %arg5[%c0_8, %c0_9, %c0_10, %c0_11, %c0_12], %14 {strides = array<i32>} : memref<1x16x2x16x128xf32, #tpu.memory_space<vmem>>, vector<1x16x2x16x128xf32>,
    return
  }
  func.func @transform_0(%arg0: i32, %arg1: i32) -> (i32, i32, i32, i32, i32) {
    %c0_i32 = arith.constant 0 : i32
    %c0_i32_0 = arith.constant 0 : i32
    %c0_i32_1 = arith.constant 0 : i32
    %c0_i32_2 = arith.constant 0 : i32
    return %arg0, %arg1, %c0_i32, %c0_i32_0, %c0_i32_1 : i32, i32, i32, i32, i32
  }
  func.func @transform_1(%arg0: i32, %arg1: i32) -> (i32, i32) {
    %c0_i32 = arith.constant 0 : i32
    %c0_i32_0 = arith.constant 0 : i32
    %c0_i32_1 = arith.constant 0 : i32
    return %c0_i32, %c0_i32_0 : i32, i32
  }
  func.func @transform_2(%arg0: i32, %arg1: i32) -> (i32, i32) {
    %c0_i32 = arith.constant 0 : i32
    %c0_i32_0 = arith.constant 0 : i32
    %c0_i32_1 = arith.constant 0 : i32
    return %c0_i32, %c0_i32_0 : i32, i32
  }
  func.func @transform_3(%arg0: i32, %arg1: i32) -> (i32, i32, i32, i32, i32) {
    %c0_i32 = arith.constant 0 : i32
    %c0_i32_0 = arith.constant 0 : i32
    %c0_i32_1 = arith.constant 0 : i32
    %c0_i32_2 = arith.constant 0 : i32
    return %arg0, %arg1, %c0_i32, %c0_i32_0, %c0_i32_1 : i32, i32, i32, i32, i32
  }
}

</mosaic_0001>

<bundles_post_ra>
// kernel: upblock2d_forward.3
= control target key start
LH: loop header
LB: loop body
LE: loop exit
PB: predicated region body
PF: predicated region fallthrough
CT: control target
= control target key end

     0   :  { %s765_s12 = smov 0   ;;  %s767_s13 = smov 0   ;;  %s1086_s0 = inlined_call_operand.vmem [shape: f32[2,32,2,16,128], index: 0, kind: input, shape index: {}]   ;;  %s1087_s1 = inlined_call_operand.vmem [shape: f32[1,128], index: 1, kind: input, shape index: {}]   ;;  %s1088_s2 = inlined_call_operand.vmem [shape: f32[1,128], index: 2, kind: input, shape index: {}]   ;;  %s1089_s3 = inlined_call_operand.vmem [shape: f32[2,32,2,16,128], index: 3, kind: output, shape index: {}]  }
   0x1   :  { %s769_s14 = smov 0   ;;  %s771_s15 = smov 0  }
   0x2   :  { %s773_s16 = smov 0  }
   0x3 LB: > { %s22_s17 = sadd.s32 1, %s735_s14  ;;  %s25_s18 = sadd.s32 1, %s739_s15  ;;  %s743_s16 = sphi %s773_s16, %s13_s16   ;;  %s739_s15 = sphi %s771_s15, %s1093_s15   ;;  %s735_s14 = sphi %s769_s14, %s1092_s14   ;;  %s731_s13 = sphi %s767_s13, %s1091_s13   ;;  %s727_s12 = sphi %s765_s12, %s1090_s12  }
   0x4   : > { %p23_p0 = scmp.ge.s32.totalorder %s22_s17, 2  ;;  %p652_p1 = scmp.ge.s32.totalorder %s743_s16, 1 }
   0x5   : > { %p159_p2 = scmp.lt.s32.totalorder %s743_s16, 5 }
   0x6   : > { %s1095_s17 = smov (%p23_p0, %s22_s17), 0  ;;  %s1097_s18 = smov (!%p23_p0, %s25_s18), %s739_s15 }
   0x7   : > { %p160_p3 = pnand %p652_p1, %p159_p2  ;;  %p27_p4 = scmp.ge.s32.totalorder %s1097_s18, 2 }
   0x8   : > { %s653_s19 = sshll.u32 (!%p160_p3), %s727_s12, 4  ;;  %p194_p5 = scmp.lt.s32.totalorder (!%p160_p3), %s731_s13, 1  ;;  %v798_v0 = vld [vmem:[%s1087_s1] ss:$0 sm:$0xff] (!%p160_p3) }
   0x9   : > { %s1099_s18 = smov (%p27_p4, %s1097_s18), 0  ;;  %163 = sbr.rel (%p160_p3) target bundleno = 75 (0x4b), region = 32 }
   0xa   : > { %p196_p6 = scmp.lt.s32.totalorder (!%p160_p3), %s653_s19, 31  ;;  %v808_v1 = vld [vmem:[%s1088_s2] ss:$0 sm:$0xff] (!%p160_p3) }
  0x10   : > { %s1101_s13 = smov (!%p194_p5, %s731_s13), 1  ;;  %s1103_s19 = smov (!%p196_p6, %s653_s19), 31 }
  0x11   : > { %s655_s20 = sshll.u32 %s1101_s13, 7  ;;  %s654_s21 = sshll.u32 %s1103_s19, 2 }
  0x12   : > { %s200_s22 = sadd.s32 %s655_s20, %s654_s21 }
  0x13   : > { %s656_s23 = sshll.u32 %s200_s22, 3 }
  0x14   : > { %s803_s28 = scalar_lea.vmem %s1086_s0, %s656_s23  ;;  %s831_s6 = scalar_lea.vmem %s1089_s3, %s656_s23 }
  0x15   : > { %v215_v2 = vld [vmem:[%s803_s28] sm:$0xff]  ;;  %v216_v3 = vld [vmem:[%s803_s28 + $0x8] sm:$0xff]  ;;  %v217_v4 = vld [vmem:[%s803_s28 + $0x10] sm:$0xff] }
  0x16   : > { %v286_v5 = vmul.f32 %v798_v0, %v215_v2  ;;  %v287_v6 = vmul.f32 %v798_v0, %v216_v3  ;;  %v288_v7 = vmul.f32 %v798_v0, %v217_v4  ;;  %v218_v8 = vld [vmem:[%s803_s28 + $0x18] sm:$0xff]  ;;  %v219_v9 = vld [vmem:[%s803_s28 + $0x20] sm:$0xff]  ;;  %v220_v10 = vld [vmem:[%s803_s28 + $0x28] sm:$0xff] }
  0x17   : > { %v289_v11 = vmul.f32 %v798_v0, %v218_v8  ;;  %v290_v12 = vmul.f32 %v798_v0, %v219_v9  ;;  %v291_v13 = vmul.f32 %v798_v0, %v220_v10  ;;  %v221_v14 = vld [vmem:[%s803_s28 + $0x30] sm:$0xff]  ;;  %v222_v15 = vld [vmem:[%s803_s28 + $0x38] sm:$0xff]  ;;  %v223_v24 = vld [vmem:[%s803_s28 + $0x40] sm:$0xff] }
  0x18   : > { %v357_v16 = vadd.f32 %v808_v1, %v286_v5  ;;  %v358_v17 = vadd.f32 %v808_v1, %v287_v6  ;;  %v359_v18 = vadd.f32 %v808_v1, %v288_v7  ;;  %v292_v19 = vmul.f32 %v798_v0, %v221_v14  ;;  %v224_v25 = vld [vmem:[%s803_s28 + $0x48] sm:$0xff]  ;;  %v225_v26 = vld [vmem:[%s803_s28 + $0x50] sm:$0xff]  ;;  %v226_v31 = vld [vmem:[%s803_s28 + $0x58] sm:$0xff] }
  0x19   : > { %v360_v20 = vadd.f32 %v808_v1, %v289_v11  ;;  %v361_v21 = vadd.f32 %v808_v1, %v290_v12  ;;  %v362_v22 = vadd.f32 %v808_v1, %v291_v13  ;;  %v293_v23 = vmul.f32 %v798_v0, %v222_v15  ;;  %v227_v32 = vld [vmem:[%s803_s28 + $0x60] sm:$0xff]  ;;  %v228_v33 = vld [vmem:[%s803_s28 + $0x68] sm:$0xff]  ;;  %v229_v38 = vld [vmem:[%s803_s28 + $0x70] sm:$0xff] }
  0x1a   : > { %v421_v27 = vmax.f32 %v357_v16, 0.0  ;;  %v422_v28 = vmax.f32 %v358_v17, 0.0  ;;  %v423_v29 = vmax.f32 %v359_v18, 0.0  ;;  %v363_v30 = vadd.f32 %v808_v1, %v292_v19  ;;  %v230_v43 = vld [vmem:[%s803_s28 + $0x78] sm:$0xff]  ;;  %v231_v56 = vld [vmem:[%s803_s28 + $0x80] sm:$0xff]  ;;  %v232_v57 = vld [vmem:[%s803_s28 + $0x88] sm:$0xff] }
  0x1b   : > { %v424_v34 = vmax.f32 %v360_v20, 0.0  ;;  %v425_v35 = vmax.f32 %v361_v21, 0.0  ;;  %v426_v36 = vmax.f32 %v362_v22, 0.0  ;;  %v364_v37 = vadd.f32 %v808_v1, %v293_v23  ;;  %v233_v58 = vld [vmem:[%s803_s28 + $0x90] sm:$0xff]  ;;  %v234_v63 = vld [vmem:[%s803_s28 + $0x98] sm:$0xff]  ;;  %v235_v2 = vld [vmem:[%s803_s28 + $0xa0] sm:$0xff] }
  0x1c   : > { %485 = vst [vmem:[%s831_s6] sm:$0xff] %v421_v27  ;;  %486 = vst [vmem:[%s831_s6 + $0x8] sm:$0xff] %v422_v28  ;;  %v427_v39 = vmax.f32 %v363_v30, 0.0  ;;  %v294_v40 = vmul.f32 %v798_v0, %v223_v24  ;;  %v295_v41 = vmul.f32 %v798_v0, %v224_v25  ;;  %v296_v42 = vmul.f32 %v798_v0, %v225_v26  ;;  %v236_v3 = vld [vmem:[%s803_s28 + $0xa8] sm:$0xff]  ;;  %v237_v8 = vld [vmem:[%s803_s28 + $0xb0] sm:$0xff] }
  0x1d   : > { %487 = vst [vmem:[%s831_s6 + $0x10] sm:$0xff] %v423_v29  ;;  %488 = vst [vmem:[%s831_s6 + $0x18] sm:$0xff] %v424_v34  ;;  %v428_v44 = vmax.f32 %v364_v37, 0.0  ;;  %v297_v45 = vmul.f32 %v798_v0, %v226_v31  ;;  %v298_v46 = vmul.f32 %v798_v0, %v227_v32  ;;  %v299_v47 = vmul.f32 %v798_v0, %v228_v33  ;;  %v238_v13 = vld [vmem:[%s803_s28 + $0xb8] sm:$0xff]  ;;  %v239_v26 = vld [vmem:[%s803_s28 + $0xc0] sm:$0xff] }
  0x1e   : > { %489 = vst [vmem:[%s831_s6 + $0x20] sm:$0xff] %v425_v35  ;;  %490 = vst [vmem:[%s831_s6 + $0x28] sm:$0xff] %v426_v36  ;;  %v365_v48 = vadd.f32 %v808_v1, %v294_v40  ;;  %v366_v49 = vadd.f32 %v808_v1, %v295_v41  ;;  %v367_v50 = vadd.f32 %v808_v1, %v296_v42  ;;  %v240_v27 = vld [vmem:[%s803_s28 + $0xc8] sm:$0xff]  ;;  %v241_v28 = vld [vmem:[%s803_s28 + $0xd0] sm:$0xff] }
  0x1f   : > { %491 = vst [vmem:[%s831_s6 + $0x30] sm:$0xff] %v427_v39  ;;  %v300_v51 = vmul.f32 %v798_v0, %v229_v38  ;;  %492 = vst [vmem:[%s831_s6 + $0x38] sm:$0xff] %v428_v44  ;;  %v368_v52 = vadd.f32 %v808_v1, %v297_v45  ;;  %v369_v53 = vadd.f32 %v808_v1, %v298_v46  ;;  %v242_v33 = vld [vmem:[%s803_s28 + $0xd8] sm:$0xff]  ;;  %v243_v34 = vld [vmem:[%s803_s28 + $0xe0] sm:$0xff] }
  0x20   : > { %v370_v54 = vadd.f32 %v808_v1, %v299_v47  ;;  %v301_v55 = vmul.f32 %v798_v0, %v230_v43  ;;  %v429_v59 = vmax.f32 %v365_v48, 0.0  ;;  %v430_v60 = vmax.f32 %v366_v49, 0.0  ;;  %v244_v35 = vld [vmem:[%s803_s28 + $0xe8] sm:$0xff]  ;;  %v245_v40 = vld [vmem:[%s803_s28 + $0xf0] sm:$0xff]  ;;  %v246_v45 = vld [vmem:[%s803_s28 + $0xf8] sm:$0xff] }
  0x21   : > { %v431_v61 = vmax.f32 %v367_v50, 0.0  ;;  %v371_v62 = vadd.f32 %v808_v1, %v300_v51  ;;  %v432_v4 = vmax.f32 %v368_v52, 0.0  ;;  %v433_v5 = vmax.f32 %v369_v53, 0.0 }
  0x22   : > { %v434_v6 = vmax.f32 %v370_v54, 0.0  ;;  %v372_v7 = vadd.f32 %v808_v1, %v301_v55  ;;  %493 = vst [vmem:[%s831_s6 + $0x40] sm:$0xff] %v429_v59  ;;  %494 = vst [vmem:[%s831_s6 + $0x48] sm:$0xff] %v430_v60  ;;  %v302_v10 = vmul.f32 %v798_v0, %v231_v56  ;;  %v303_v11 = vmul.f32 %v798_v0, %v232_v57  ;;  %v248_v59 = vld [vmem:[%s803_s28 + $0x108] sm:$0xff]  ;;  %v249_v60 = vld [vmem:[%s803_s28 + $0x110] sm:$0xff] }
  0x23   : > { %495 = vst [vmem:[%s831_s6 + $0x50] sm:$0xff] %v431_v61  ;;  %v435_v9 = vmax.f32 %v371_v62, 0.0  ;;  %v304_v12 = vmul.f32 %v798_v0, %v233_v58  ;;  %496 = vst [vmem:[%s831_s6 + $0x58] sm:$0xff] %v432_v4  ;;  %v305_v15 = vmul.f32 %v798_v0, %v234_v63  ;;  %v306_v16 = vmul.f32 %v798_v0, %v235_v2  ;;  %v247_v58 = vld [vmem:[%s803_s28 + $0x100] sm:$0xff] }
  0x24   : > { %497 = vst [vmem:[%s831_s6 + $0x60] sm:$0xff] %v433_v5  ;;  %498 = vst [vmem:[%s831_s6 + $0x68] sm:$0xff] %v434_v6  ;;  %v436_v14 = vmax.f32 %v372_v7, 0.0  ;;  %v307_v17 = vmul.f32 %v798_v0, %v236_v3  ;;  %v373_v18 = vadd.f32 %v808_v1, %v302_v10  ;;  %v374_v19 = vadd.f32 %v808_v1, %v303_v11  ;;  %v250_v3 = vld [vmem:[%s803_s28 + $0x118] sm:$0xff]  ;;  %v251_v4 = vld [vmem:[%s803_s28 + $0x120] sm:$0xff] }
  0x25   : > { %499 = vst [vmem:[%s831_s6 + $0x70] sm:$0xff] %v435_v9  ;;  %v375_v20 = vadd.f32 %v808_v1, %v304_v12  ;;  %v308_v21 = vmul.f32 %v798_v0, %v237_v8  ;;  %v376_v22 = vadd.f32 %v808_v1, %v305_v15  ;;  %v377_v23 = vadd.f32 %v808_v1, %v306_v16  ;;  %v252_v5 = vld [vmem:[%s803_s28 + $0x128] sm:$0xff]  ;;  %v253_v10 = vld [vmem:[%s803_s28 + $0x130] sm:$0xff]  ;;  %v254_v15 = vld [vmem:[%s803_s28 + $0x138] sm:$0xff] }
  0x26   : > { %500 = vst [vmem:[%s831_s6 + $0x78] sm:$0xff] %v436_v14  ;;  %v378_v24 = vadd.f32 %v808_v1, %v307_v17  ;;  %v309_v25 = vmul.f32 %v798_v0, %v238_v13  ;;  %v437_v29 = vmax.f32 %v373_v18, 0.0  ;;  %v438_v30 = vmax.f32 %v374_v19, 0.0 }
  0x27   : > { %v439_v31 = vmax.f32 %v375_v20, 0.0  ;;  %v379_v32 = vadd.f32 %v808_v1, %v308_v21  ;;  %v440_v36 = vmax.f32 %v376_v22, 0.0  ;;  %v441_v37 = vmax.f32 %v377_v23, 0.0 }
  0x28   : > { %v442_v38 = vmax.f32 %v378_v24, 0.0  ;;  %v380_v39 = vadd.f32 %v808_v1, %v309_v25  ;;  %501 = vst [vmem:[%s831_s6 + $0x80] sm:$0xff] %v437_v29  ;;  %502 = vst [vmem:[%s831_s6 + $0x88] sm:$0xff] %v438_v30  ;;  %v310_v42 = vmul.f32 %v798_v0, %v239_v26  ;;  %v311_v43 = vmul.f32 %v798_v0, %v240_v27  ;;  %v256_v29 = vld [vmem:[%s803_s28 + $0x148] sm:$0xff]  ;;  %v257_v30 = vld [vmem:[%s803_s28 + $0x150] sm:$0xff] }
  0x29   : > { %503 = vst [vmem:[%s831_s6 + $0x90] sm:$0xff] %v439_v31  ;;  %v443_v41 = vmax.f32 %v379_v32, 0.0  ;;  %v312_v44 = vmul.f32 %v798_v0, %v241_v28  ;;  %504 = vst [vmem:[%s831_s6 + $0x98] sm:$0xff] %v440_v36  ;;  %v313_v47 = vmul.f32 %v798_v0, %v242_v33  ;;  %v314_v48 = vmul.f32 %v798_v0, %v243_v34  ;;  %v255_v28 = vld [vmem:[%s803_s28 + $0x140] sm:$0xff] }
  0x2a   : > { %505 = vst [vmem:[%s831_s6 + $0xa0] sm:$0xff] %v441_v37  ;;  %506 = vst [vmem:[%s831_s6 + $0xa8] sm:$0xff] %v442_v38  ;;  %v444_v46 = vmax.f32 %v380_v39, 0.0  ;;  %v315_v49 = vmul.f32 %v798_v0, %v244_v35  ;;  %v381_v50 = vadd.f32 %v808_v1, %v310_v42  ;;  %v382_v51 = vadd.f32 %v808_v1, %v311_v43  ;;  %v258_v35 = vld [vmem:[%s803_s28 + $0x158] sm:$0xff]  ;;  %v259_v36 = vld [vmem:[%s803_s28 + $0x160] sm:$0xff] }
  0x2b   : > { %507 = vst [vmem:[%s831_s6 + $0xb0] sm:$0xff] %v443_v41  ;;  %v383_v52 = vadd.f32 %v808_v1, %v312_v44  ;;  %v316_v53 = vmul.f32 %v798_v0, %v245_v40  ;;  %v384_v54 = vadd.f32 %v808_v1, %v313_v47  ;;  %v385_v55 = vadd.f32 %v808_v1, %v314_v48  ;;  %v260_v37 = vld [vmem:[%s803_s28 + $0x168] sm:$0xff]  ;;  %v261_v42 = vld [vmem:[%s803_s28 + $0x170] sm:$0xff]  ;;  %v262_v47 = vld [vmem:[%s803_s28 + $0x178] sm:$0xff] }
  0x2c   : > { %508 = vst [vmem:[%s831_s6 + $0xb8] sm:$0xff] %v444_v46  ;;  %v386_v56 = vadd.f32 %v808_v1, %v315_v49  ;;  %v317_v57 = vmul.f32 %v798_v0, %v246_v45  ;;  %v445_v61 = vmax.f32 %v381_v50, 0.0  ;;  %v446_v62 = vmax.f32 %v382_v51, 0.0 }
  0x2d   : > { %v447_v63 = vmax.f32 %v383_v52, 0.0  ;;  %v387_v2 = vadd.f32 %v808_v1, %v316_v53  ;;  %v448_v6 = vmax.f32 %v384_v54, 0.0  ;;  %v449_v7 = vmax.f32 %v385_v55, 0.0 }
  0x2e   : > { %v450_v8 = vmax.f32 %v386_v56, 0.0  ;;  %v388_v9 = vadd.f32 %v808_v1, %v317_v57  ;;  %509 = vst [vmem:[%s831_s6 + $0xc0] sm:$0xff] %v445_v61  ;;  %510 = vst [vmem:[%s831_s6 + $0xc8] sm:$0xff] %v446_v62  ;;  %v318_v12 = vmul.f32 %v798_v0, %v247_v58  ;;  %v319_v13 = vmul.f32 %v798_v0, %v248_v59  ;;  %v264_v61 = vld [vmem:[%s803_s28 + $0x188] sm:$0xff]  ;;  %v265_v62 = vld [vmem:[%s803_s28 + $0x190] sm:$0xff] }
  0x2f   : > { %511 = vst [vmem:[%s831_s6 + $0xd0] sm:$0xff] %v447_v63  ;;  %v451_v11 = vmax.f32 %v387_v2, 0.0  ;;  %v320_v14 = vmul.f32 %v798_v0, %v249_v60  ;;  %512 = vst [vmem:[%s831_s6 + $0xd8] sm:$0xff] %v448_v6  ;;  %v321_v17 = vmul.f32 %v798_v0, %v250_v3  ;;  %v322_v18 = vmul.f32 %v798_v0, %v251_v4  ;;  %v263_v60 = vld [vmem:[%s803_s28 + $0x180] sm:$0xff] }
  0x30   : > { %513 = vst [vmem:[%s831_s6 + $0xe0] sm:$0xff] %v449_v7  ;;  %514 = vst [vmem:[%s831_s6 + $0xe8] sm:$0xff] %v450_v8  ;;  %v452_v16 = vmax.f32 %v388_v9, 0.0  ;;  %v323_v19 = vmul.f32 %v798_v0, %v252_v5  ;;  %v389_v20 = vadd.f32 %v808_v1, %v318_v12  ;;  %v390_v21 = vadd.f32 %v808_v1, %v319_v13  ;;  %v266_v5 = vld [vmem:[%s803_s28 + $0x198] sm:$0xff]  ;;  %v267_v6 = vld [vmem:[%s803_s28 + $0x1a0] sm:$0xff] }
  0x31   : > { %515 = vst [vmem:[%s831_s6 + $0xf0] sm:$0xff] %v451_v11  ;;  %v391_v22 = vadd.f32 %v808_v1, %v320_v14  ;;  %v324_v23 = vmul.f32 %v798_v0, %v253_v10  ;;  %v392_v24 = vadd.f32 %v808_v1, %v321_v17  ;;  %v393_v25 = vadd.f32 %v808_v1, %v322_v18  ;;  %v268_v7 = vld [vmem:[%s803_s28 + $0x1a8] sm:$0xff]  ;;  %v269_v12 = vld [vmem:[%s803_s28 + $0x1b0] sm:$0xff]  ;;  %v270_v17 = vld [vmem:[%s803_s28 + $0x1b8] sm:$0xff] }
  0x32   : > { %516 = vst [vmem:[%s831_s6 + $0xf8] sm:$0xff] %v452_v16  ;;  %v394_v26 = vadd.f32 %v808_v1, %v323_v19  ;;  %v325_v27 = vmul.f32 %v798_v0, %v254_v15  ;;  %v453_v31 = vmax.f32 %v389_v20, 0.0  ;;  %v454_v32 = vmax.f32 %v390_v21, 0.0 }
  0x33   : > { %v455_v33 = vmax.f32 %v391_v22, 0.0  ;;  %v395_v34 = vadd.f32 %v808_v1, %v324_v23  ;;  %v456_v38 = vmax.f32 %v392_v24, 0.0  ;;  %v457_v39 = vmax.f32 %v393_v25, 0.0 }
  0x34   : > { %v458_v40 = vmax.f32 %v394_v26, 0.0  ;;  %v396_v41 = vadd.f32 %v808_v1, %v325_v27  ;;  %517 = vst [vmem:[%s831_s6 + $0x100] sm:$0xff] %v453_v31  ;;  %518 = vst [vmem:[%s831_s6 + $0x108] sm:$0xff] %v454_v32  ;;  %v326_v44 = vmul.f32 %v798_v0, %v255_v28  ;;  %v327_v45 = vmul.f32 %v798_v0, %v256_v29  ;;  %v272_v31 = vld [vmem:[%s803_s28 + $0x1c8] sm:$0xff]  ;;  %v273_v32 = vld [vmem:[%s803_s28 + $0x1d0] sm:$0xff] }
  0x35   : > { %519 = vst [vmem:[%s831_s6 + $0x110] sm:$0xff] %v455_v33  ;;  %v459_v43 = vmax.f32 %v395_v34, 0.0  ;;  %v328_v46 = vmul.f32 %v798_v0, %v257_v30  ;;  %520 = vst [vmem:[%s831_s6 + $0x118] sm:$0xff] %v456_v38  ;;  %v329_v49 = vmul.f32 %v798_v0, %v258_v35  ;;  %v330_v50 = vmul.f32 %v798_v0, %v259_v36  ;;  %v271_v30 = vld [vmem:[%s803_s28 + $0x1c0] sm:$0xff] }
  0x36   : > { %521 = vst [vmem:[%s831_s6 + $0x120] sm:$0xff] %v457_v39  ;;  %522 = vst [vmem:[%s831_s6 + $0x128] sm:$0xff] %v458_v40  ;;  %v460_v48 = vmax.f32 %v396_v41, 0.0  ;;  %v331_v51 = vmul.f32 %v798_v0, %v260_v37  ;;  %v397_v52 = vadd.f32 %v808_v1, %v326_v44  ;;  %v398_v53 = vadd.f32 %v808_v1, %v327_v45  ;;  %v274_v37 = vld [vmem:[%s803_s28 + $0x1d8] sm:$0xff]  ;;  %v275_v38 = vld [vmem:[%s803_s28 + $0x1e0] sm:$0xff] }
  0x37   : > { %523 = vst [vmem:[%s831_s6 + $0x130] sm:$0xff] %v459_v43  ;;  %v399_v54 = vadd.f32 %v808_v1, %v328_v46  ;;  %v332_v55 = vmul.f32 %v798_v0, %v261_v42  ;;  %v400_v56 = vadd.f32 %v808_v1, %v329_v49  ;;  %v401_v57 = vadd.f32 %v808_v1, %v330_v50  ;;  %v276_v39 = vld [vmem:[%s803_s28 + $0x1e8] sm:$0xff]  ;;  %v277_v44 = vld [vmem:[%s803_s28 + $0x1f0] sm:$0xff]  ;;  %v278_v49 = vld [vmem:[%s803_s28 + $0x1f8] sm:$0xff] }
  0x38   : > { %524 = vst [vmem:[%s831_s6 + $0x138] sm:$0xff] %v460_v48  ;;  %v402_v58 = vadd.f32 %v808_v1, %v331_v51  ;;  %v333_v59 = vmul.f32 %v798_v0, %v262_v47  ;;  %v461_v63 = vmax.f32 %v397_v52, 0.0  ;;  %v462_v2 = vmax.f32 %v398_v53, 0.0 }
  0x39   : > { %v463_v3 = vmax.f32 %v399_v54, 0.0  ;;  %v403_v4 = vadd.f32 %v808_v1, %v332_v55  ;;  %v464_v8 = vmax.f32 %v400_v56, 0.0  ;;  %v465_v9 = vmax.f32 %v401_v57, 0.0 }
  0x3a   : > { %v466_v10 = vmax.f32 %v402_v58, 0.0  ;;  %v404_v11 = vadd.f32 %v808_v1, %v333_v59  ;;  %525 = vst [vmem:[%s831_s6 + $0x140] sm:$0xff] %v461_v63  ;;  %526 = vst [vmem:[%s831_s6 + $0x148] sm:$0xff] %v462_v2  ;;  %v334_v14 = vmul.f32 %v798_v0, %v263_v60  ;;  %v335_v15 = vmul.f32 %v798_v0, %v264_v61 }
  0x3b   : > { %527 = vst [vmem:[%s831_s6 + $0x150] sm:$0xff] %v463_v3  ;;  %v467_v13 = vmax.f32 %v403_v4, 0.0  ;;  %v336_v16 = vmul.f32 %v798_v0, %v265_v62  ;;  %528 = vst [vmem:[%s831_s6 + $0x158] sm:$0xff] %v464_v8  ;;  %v337_v19 = vmul.f32 %v798_v0, %v266_v5  ;;  %v338_v20 = vmul.f32 %v798_v0, %v267_v6 }
  0x3c   : > { %529 = vst [vmem:[%s831_s6 + $0x160] sm:$0xff] %v465_v9  ;;  %530 = vst [vmem:[%s831_s6 + $0x168] sm:$0xff] %v466_v10  ;;  %v468_v18 = vmax.f32 %v404_v11, 0.0  ;;  %v339_v21 = vmul.f32 %v798_v0, %v268_v7  ;;  %v405_v22 = vadd.f32 %v808_v1, %v334_v14  ;;  %v406_v23 = vadd.f32 %v808_v1, %v335_v15 }
  0x3d   : > { %531 = vst [vmem:[%s831_s6 + $0x170] sm:$0xff] %v467_v13  ;;  %v407_v24 = vadd.f32 %v808_v1, %v336_v16  ;;  %v340_v25 = vmul.f32 %v798_v0, %v269_v12  ;;  %v408_v26 = vadd.f32 %v808_v1, %v337_v19  ;;  %v409_v27 = vadd.f32 %v808_v1, %v338_v20 }
  0x3e   : > { %532 = vst [vmem:[%s831_s6 + $0x178] sm:$0xff] %v468_v18  ;;  %v410_v28 = vadd.f32 %v808_v1, %v339_v21  ;;  %v341_v29 = vmul.f32 %v798_v0, %v270_v17  ;;  %v469_v33 = vmax.f32 %v405_v22, 0.0  ;;  %v470_v34 = vmax.f32 %v406_v23, 0.0 }
  0x3f   : > { %v471_v35 = vmax.f32 %v407_v24, 0.0  ;;  %v411_v36 = vadd.f32 %v808_v1, %v340_v25  ;;  %v472_v40 = vmax.f32 %v408_v26, 0.0  ;;  %v473_v41 = vmax.f32 %v409_v27, 0.0 }
  0x40   : > { %v474_v42 = vmax.f32 %v410_v28, 0.0  ;;  %v412_v43 = vadd.f32 %v808_v1, %v341_v29  ;;  %533 = vst [vmem:[%s831_s6 + $0x180] sm:$0xff] %v469_v33  ;;  %534 = vst [vmem:[%s831_s6 + $0x188] sm:$0xff] %v470_v34  ;;  %v342_v46 = vmul.f32 %v798_v0, %v271_v30  ;;  %v343_v47 = vmul.f32 %v798_v0, %v272_v31 }
  0x41   : > { %535 = vst [vmem:[%s831_s6 + $0x190] sm:$0xff] %v471_v35  ;;  %v475_v45 = vmax.f32 %v411_v36, 0.0  ;;  %v344_v48 = vmul.f32 %v798_v0, %v273_v32  ;;  %536 = vst [vmem:[%s831_s6 + $0x198] sm:$0xff] %v472_v40  ;;  %v345_v51 = vmul.f32 %v798_v0, %v274_v37  ;;  %v346_v52 = vmul.f32 %v798_v0, %v275_v38 }
  0x42   : > { %537 = vst [vmem:[%s831_s6 + $0x1a0] sm:$0xff] %v473_v41  ;;  %538 = vst [vmem:[%s831_s6 + $0x1a8] sm:$0xff] %v474_v42  ;;  %v476_v50 = vmax.f32 %v412_v43, 0.0  ;;  %v347_v53 = vmul.f32 %v798_v0, %v276_v39  ;;  %v413_v54 = vadd.f32 %v808_v1, %v342_v46  ;;  %v414_v55 = vadd.f32 %v808_v1, %v343_v47 }
  0x43   : > { %539 = vst [vmem:[%s831_s6 + $0x1b0] sm:$0xff] %v475_v45  ;;  %v415_v56 = vadd.f32 %v808_v1, %v344_v48  ;;  %v348_v57 = vmul.f32 %v798_v0, %v277_v44  ;;  %v416_v58 = vadd.f32 %v808_v1, %v345_v51  ;;  %v417_v59 = vadd.f32 %v808_v1, %v346_v52 }
  0x44   : > { %540 = vst [vmem:[%s831_s6 + $0x1b8] sm:$0xff] %v476_v50  ;;  %v418_v60 = vadd.f32 %v808_v1, %v347_v53  ;;  %v349_v61 = vmul.f32 %v798_v0, %v278_v49  ;;  %v477_v62 = vmax.f32 %v413_v54, 0.0  ;;  %v478_v63 = vmax.f32 %v414_v55, 0.0 }
  0x45   : > { %v479_v2 = vmax.f32 %v415_v56, 0.0  ;;  %v419_v3 = vadd.f32 %v808_v1, %v348_v57  ;;  %v480_v4 = vmax.f32 %v416_v58, 0.0  ;;  %v481_v5 = vmax.f32 %v417_v59, 0.0 }
  0x46   : > { %v482_v6 = vmax.f32 %v418_v60, 0.0  ;;  %v420_v7 = vadd.f32 %v808_v1, %v349_v61  ;;  %541 = vst [vmem:[%s831_s6 + $0x1c0] sm:$0xff] %v477_v62  ;;  %542 = vst [vmem:[%s831_s6 + $0x1c8] sm:$0xff] %v478_v63 }
  0x47   : > { %543 = vst [vmem:[%s831_s6 + $0x1d0] sm:$0xff] %v479_v2  ;;  %v483_v8 = vmax.f32 %v419_v3, 0.0  ;;  %544 = vst [vmem:[%s831_s6 + $0x1d8] sm:$0xff] %v480_v4 }
  0x48   : > { %545 = vst [vmem:[%s831_s6 + $0x1e0] sm:$0xff] %v481_v5  ;;  %546 = vst [vmem:[%s831_s6 + $0x1e8] sm:$0xff] %v482_v6  ;;  %v484_v0 = vmax.f32 %v420_v7, 0.0 }
  0x49   : > { %547 = vst [vmem:[%s831_s6 + $0x1f0] sm:$0xff] %v483_v8 }
  0x4a   : > { %548 = vst [vmem:[%s831_s6 + $0x1f8] sm:$0xff] %v484_v0 }
  0x4b PF: > { %s13_s16 = sadd.s32 1, %s743_s16   ;;  %s1090_s12 = smov %s735_s14 }
  0x4c   : > { %p10_p7 = scmp.ge.s32.totalorder %s13_s16, 6   ;;  %s1091_s13 = smov %s739_s15 }
  0x4d   : > { %s1092_s14 = smov %s1095_s17  ;;  %s1093_s15 = smov %s1099_s18 }
  0x4e   :  { %12 = sbr.rel (!%p10_p7) target bundleno = 3 (0x3), region = 62 }

// kernel: upblock2d_forward.2
= control target key start
LH: loop header
LB: loop body
LE: loop exit
PB: predicated region body
PF: predicated region fallthrough
CT: control target
= control target key end

     0   :  { %s2535_s18 = smov 0   ;;  %s2537_s19 = smov 0   ;;  %s3271_s0 = inlined_call_operand.vmem [shape: f32[2,16,18,4], index: 0, kind: input, shape index: {}, may-alias: {0,1,2}]   ;;  %s3272_s1 = inlined_call_operand.vmem [shape: f32[2,16,18,4], index: 1, kind: input, shape index: {}, may-alias: {0,1,2}]   ;;  %s3273_s2 = inlined_call_operand.vmem [shape: f32[2,16,18,4], index: 2, kind: input, shape index: {}, may-alias: {0,1,2}]   ;;  %s3274_s3 = inlined_call_operand.vmem [shape: f32[4,16,128], index: 3, kind: input, shape index: {}]   ;;  %s3275_s4 = inlined_call_operand.vmem [shape: f32[2,32,2,16,128], index: 4, kind: output, shape index: {0}]   ;;  %s3276_s5 = inlined_call_operand.vmem [shape: f32[2,2,2,128], index: 5, kind: output, shape index: {1}]  }
   0x1   :  { %s2539_s20 = smov 0   ;;  %s2541_s21 = smov 0  }
   0x2   :  { %s2543_s22 = smov 0  }
   0x3 LB: > { %s25_s23 = sadd.s32 1, %s2492_s20  ;;  %s28_s24 = sadd.s32 1, %s2496_s21  ;;  %s2500_s22 = sphi %s2543_s22, %s16_s22   ;;  %s2496_s21 = sphi %s2541_s21, %s3280_s21   ;;  %s2492_s20 = sphi %s2539_s20, %s3279_s20   ;;  %s2488_s19 = sphi %s2537_s19, %s3278_s19   ;;  %s2484_s18 = sphi %s2535_s18, %s3277_s18  }
   0x4   : > { %p26_p0 = scmp.ge.s32.totalorder %s25_s23, 2  ;;  %p2107_p1 = scmp.ge.s32.totalorder %s2500_s22, 1 }
   0x5   : > { %p278_p2 = scmp.lt.s32.totalorder %s2500_s22, 5 }
   0x6   : > { %s3282_s23 = smov (%p26_p0, %s25_s23), 0  ;;  %s3284_s24 = smov (!%p26_p0, %s28_s24), %s2496_s21 }
   0x7   : > { %p279_p3 = pnand %p2107_p1, %p278_p2  ;;  %p30_p4 = scmp.ge.s32.totalorder %s3284_s24, 2 }
   0x8   : > { %s2568_s25 = sshll.u32 (!%p279_p3), %s2484_s18, 3  ;;  %p351_p5 = scmp.lt.s32.totalorder (!%p279_p3), %s2488_s19, 1  ;;  %vm482_vm0 = vcmask (!%p279_p3), 1046528   ;;  %v726_v9 = vld [vmem:[%s3274_s3] sm:$0xff] (!%p279_p3)  ;;  %v727_v10 = vld [vmem:[%s3274_s3 + $0x8] sm:$0xff] (!%p279_p3)  ;;  %v2145_v12 = vld [vmem:[%s3274_s3 + $0x10] sm:$0xff] (!%p279_p3) }
   0x9   : > { %s3286_s24 = smov (%p30_p4, %s3284_s24), 0  ;;  %282 = sbr.rel (%p279_p3) target bundleno = 555 (0x22b), region = 36 }
   0xa   : > { %p353_p6 = scmp.lt.s32.totalorder (!%p279_p3), %s2568_s25, 15  ;;  %s2502_s9 = smov (!%p279_p3), 8   ;;  %v2387_v11 = vpack.c.bf16 (!%p279_p3), %v727_v10, %v726_v9  ;;  %v2146_v13 = vld [vmem:[%s3274_s3 + $0x18] sm:$0xff] (!%p279_p3)  ;;  %v2181_v10 = vld [vmem:[%s3274_s3 + $0x30] sm:$0xff] (!%p279_p3)  ;;  %vm675_vm2 = vcmask (!%p279_p3), 31744   ;;  %vm692_vm3 = vcmask (!%p279_p3), 64512  }
   0xb   : > { %s2111_s10 = sadd.s32 (!%p279_p3), 4294967295, %s2568_s25  ;;  %s2503_s11 = smov (!%p279_p3), 12   ;;  %v2391_v16 = vpack.c.bf16 (!%p279_p3), %v2146_v13, %v2145_v12  ;;  %vm728_vm4 = vcmask (!%p279_p3), 130048   ;;  %vm709_vm5 = vcmask (!%p279_p3), 97280   ;;  %vm1842_vm7 = vcmask (!%p279_p3), 1040384  }
   0xc   : > { %p363_p7 = scmp.gt.s32.totalorder (!%p279_p3), %s2111_s10, 0  ;;  %p2112_p8 = scmp.lt.s32.totalorder (!%p279_p3), %s2111_s10, 15  ;;  %2388 = vmatprep.subr.bf16.mxu0 (!%p279_p3), %v2387_v11 }
   0xd   : > { %p444_p9 = scmp.eq.s32.totalorder (!%p279_p3), %s2484_s18, 0  ;;  %2390 = vmatpush3.bf16.msra.mxu0 (!%p279_p3), %v2387_v11  ;;  %2392 = vmatprep.subr.bf16.mxu1 (!%p279_p3), %v2391_v16  ;;  %s379_s17 = sadd.s32 (!%p279_p3), 8, %s2568_s25  ;;  %v2182_v11 = vld [vmem:[%s3274_s3 + $0x38] sm:$0xff] (!%p279_p3) }
   0xe   : > { %2394 = vmatpush3.bf16.msra.mxu1 (!%p279_p3), %v2391_v16  ;;  %p380_p10 = scmp.lt.s32.totalorder (!%p279_p3), %s379_s17, 15  ;;  %v2798_v12 = vpack.c.bf16 (!%p279_p3), %v2182_v11, %v2181_v10  ;;  %p451_p11 = scmp.eq.s32.totalorder (!%p279_p3), %s2484_s18, 1 }
   0xf   : > { %p408_p13 = scmp.lt.s32.totalorder (!%p279_p3), %s2484_s18, 1 }
  0x10   : > { %s3288_s19 = smov (!%p351_p5, %s2488_s19), 1  ;;  %s3290_s10 = smov (!%p363_p7, %s2111_s10), 0  ;;  %2400 = vmatprep.subr.bf16.mxu1 %v2798_v12 }
  0x11   : > { %s354_s26 = scalar_select %p353_p6, %s2568_s25, 15 }
  0x12   : > { %s2575_s27 = smul.u32 48, %s3288_s19  ;;  %s3292_s10 = smov (!%p2112_p8, %s3290_s10), 15 }
  0x13   : > { %s2403_s28 = smul.u32 3, %s354_s26  ;;  %s3294_s17 = smov (!%p380_p10, %s379_s17), 15 }
  0x14   : > { %s445_s12 = scalar_select %p444_p9, 1, 0 }
  0x15   : > { %s357_s29 = sadd.s32 %s2575_s27, %s2403_s28  ;;  %s2405_s13 = smul.u32 3, %s3292_s10 }
  0x16   : > { %s2109_s30 = sshll.u32 %s357_s29, 3  ;;  %v446_v7 = vstv %s445_s12  ;;  %s3296_s17 = smov (!%p380_p10, %s3294_s17), 15 }
  0x17   : > { %s2581_s8 = scalar_lea.vmem %s3271_s0, %s2109_s30  ;;  %s371_s15 = sadd.s32 %s2405_s13, %s2575_s27  ;;  %vm447_vm1 = vcmp.eq.s32.totalorder %v446_v7, 1  ;;  %v2163_v7 = vld [vmem:[%s3274_s3 + $0x20] sm:$0xff] }
  0x18   : > { %v2584_v0 = vld [vmem:[%s2581_s8] sm:$0xff]  ;;  %v2587_v1 = vld [vmem:[%s2581_s8 + $0x10] sm:$0x3]  ;;  %v2590_v2 = vld [vmem:[%s2581_s8 + $0x8] sm:$0xff]  ;;  %s2451_s14 = scalar_select %p444_p9, 0, 255 }
  0x19   : > { %573 = vrot.lane.b32.xlu1 %v2584_v0, %s2502_s9  ;;  %v491_v3 = vrot.slane %v2587_v1, 1  ;;  %v489_v4 = vrot.slane %v2590_v2, 1  ;;  %v488_v6 = vrot.slane %v2584_v0, 1  ;;  %s2117_s16 = sshll.u32 %s371_s15, 3  ;;  %v2637_v23 = vld [vmem:[%s2581_s8 + $0x18] sm:$0xff]  ;;  %v2641_v24 = vld [vmem:[%s2581_s8 + $0x20] sm:$0xff] }
  0x1a   : > { %s373_s7 = scalar_lea.vmem %s3272_s1, %s2117_s16  ;;  %s2504_s16 = smov 4   ;;  %v2644_v25 = vld [vmem:[%s2581_s8 + $0x28] sm:$0x3]  ;;  %v494_v27 = vrot.slane %v2641_v24, 1  ;;  %v493_v30 = vrot.slane %v2637_v23, 1  ;;  %v2667_v32 = vld [vmem:[%s2581_s8 + $0x38] sm:$0xff] }
  0x1b   : > { %1030 = vrot.lane.b32.xlu0 %v491_v3, %s2503_s11  ;;  %v492_v5 = vsel %vm482_vm0, %v489_v4, %v491_v3  ;;  %v490_v8 = vsel %vm482_vm0, %v488_v6, %v489_v4  ;;  %v440_v14 = vld [vmem:[%s373_s7 + $0x10] sm:$0x3]  ;;  %v2624_v15 = vld [vmem:[%s373_s7] sm:%s2451_s14]  ;;  %v496_v28 = vrot.slane %v2644_v25, 1  ;;  %s2654_s25 = smul.u32 3, %s3296_s17  ;;  %v499_v34 = vrot.slane %v2667_v32, 1 }
  0x1c   : > { %v2626_v17 = vsel %vm447_vm1, 0.0, %v440_v14  ;;  %v483_v18 = vrot.slane %v2624_v15, 1  ;;  %v2630_v20 = vld [vmem:[%s373_s7 + $0x8] sm:%s2451_s14]  ;;  %v495_v31 = vsel %vm482_vm0, %v493_v30, %v494_v27  ;;  %v2670_v33 = vld [vmem:[%s2581_s8 + $0x30] sm:$0xff]  ;;  %v2684_v37 = vld [vmem:[%s2581_s8 + $0x40] sm:$0x3] }
  0x1d   : > { %575 = vrot.lane.b32.xlu1 %v2590_v2, %s2502_s9  ;;  %v486_v19 = vrot.slane %v2626_v17, 1  ;;  %v484_v21 = vrot.slane %v2630_v20, 1  ;;  %v497_v29 = vsel %vm482_vm0, %v494_v27, %v496_v28  ;;  %s388_s14 = sadd.s32 %s2654_s25, %s2575_s27  ;;  %v498_v35 = vrot.slane %v2670_v33, 1  ;;  %v2695_v40 = vld [vmem:[%s2581_s8 + $0x48] sm:$0xff]  ;;  %v2698_v41 = vld [vmem:[%s2581_s8 + $0x50] sm:$0xff]  ;;  %v2722_v49 = vld [vmem:[%s2581_s8 + $0x60] sm:$0xff] }
  0x1e   : > { %v501_v38 = vrot.slane %v2684_v37, 1  ;;  %v2701_v42 = vld [vmem:[%s2581_s8 + $0x58] sm:$0x3]  ;;  %v504_v43 = vrot.slane %v2698_v41, 1  ;;  %v503_v46 = vrot.slane %v2695_v40, 1  ;;  %v2719_v48 = vld [vmem:[%s2581_s8 + $0x68] sm:$0xff] }
  0x1f   : > { %629 = vrot.lane.b32.xlu0 %v492_v5, %s2503_s11  ;;  %v485_v22 = vsel %vm482_vm0, %v483_v18, %v484_v21  ;;  %v487_v26 = vsel %vm482_vm0, %v484_v21, %v486_v19  ;;  %v500_v36 = vsel %vm482_vm0, %v498_v35, %v499_v34  ;;  %v506_v44 = vrot.slane %v2701_v42, 1  ;;  %v2736_v53 = vld [vmem:[%s2581_s8 + $0x70] sm:$0x3]  ;;  %v2747_v56 = vld [vmem:[%s2581_s8 + $0x78] sm:$0xff]  ;;  %v2750_v57 = vld [vmem:[%s2581_s8 + $0x80] sm:$0xff]  ;;  %s2122_s13 = sshll.u32 %s388_s14, 3 }
  0x20   : > { %v502_v39 = vsel %vm482_vm0, %v499_v34, %v501_v38  ;;  %v505_v47 = vsel %vm482_vm0, %v503_v46, %v504_v43  ;;  %v509_v50 = vrot.slane %v2719_v48, 1  ;;  %v508_v51 = vrot.slane %v2722_v49, 1  ;;  %v2753_v58 = vld [vmem:[%s2581_s8 + $0x88] sm:$0x3]  ;;  %v2774_v4 = vld [vmem:[%s2581_s8 + $0x90] sm:$0xff]  ;;  %s390_s25 = scalar_lea.vmem %s3273_s2, %s2122_s13  ;;  %s2127_s6 = sshll.u32 %s3288_s19, 1 }
  0x21   : > { %1006 = vrot.lane.b32.xlu1 %v2587_v1, %s2502_s9  ;;  %v507_v45 = vsel %vm482_vm0, %v504_v43, %v506_v44  ;;  %v511_v54 = vrot.slane %v2736_v53, 1  ;;  %v514_v59 = vrot.slane %v2750_v57, 1  ;;  %v516_v60 = vrot.slane %v2753_v58, 1  ;;  %v2806_v16 = vld [vmem:[%s2581_s8 + $0xa0] sm:$0x3]  ;;  %v2820_v30 = vld [vmem:[%s2581_s8 + $0xb0] sm:$0xff] }
  0x22   : > { %v510_v52 = vsel %vm482_vm0, %v508_v51, %v509_v50  ;;  %v513_v62 = vrot.slane %v2747_v56, 1  ;;  %v518_v6 = vrot.slane %v2774_v4, 1  ;;  %v521_v21 = vrot.slane %v2806_v16, 1  ;;  %s2460_s15 = scalar_select %p451_p11, 0, 255 }
  0x23   : > { %982 = vrot.lane.b32.xlu0 %v486_v19, %s2504_s16  ;;  %v512_v55 = vsel %vm482_vm0, %v509_v50, %v511_v54  ;;  %v517_v61 = vsel %vm482_vm0, %v514_v59, %v516_v60  ;;  %v623_v34 = vrot.slane %v2820_v30, 1 }
  0x24   : > { %v515_v63 = vsel %vm482_vm0, %v513_v62, %v514_v59  ;;  %v2458_v11 = vld [vmem:[%s390_s25] sm:%s2460_s15] }
  0x25   : > { %627 = vrot.lane.b32.xlu1 %v490_v8, %s2503_s11 }
  0x27   : > { %523 = vrot.lane.b32.xlu0 %v485_v22, %s2504_s16 }
  0x29   : > { %527 = vrot.lane.b32.xlu1 %v490_v8, %s2504_s16  ;;  %v2164_v8 = vld [vmem:[%s3274_s3 + $0x28] sm:$0xff] }
  0x2a   : > { %v2786_v9 = vpack.c.bf16 %v2164_v8, %v2163_v7  ;;  %v2461_v7 = vld [vmem:[%s390_s25 + $0x8] sm:%s2460_s15] }
  0x2b   : > { %525 = vrot.lane.b32.xlu0 %v487_v26, %s2504_s16 }
  0x2c   : > { %2396 = vmatprep.subr.bf16.mxu0 %v2786_v9 }
  0x2d   : > { %577 = vrot.lane.b32.xlu1 %v2637_v23, %s2502_s9 }
  0x2f   : > { %529 = vrot.lane.b32.xlu0 %v492_v5, %s2504_s16 }
  0x31   : > { %984 = vrot.lane.b32.xlu1 %v491_v3, %s2504_s16  ;;  %v2771_v3 = vld [vmem:[%s2581_s8 + $0x98] sm:$0xff] }
  0x32   : > { %v519_v5 = vrot.slane %v2771_v3, 1 }
  0x33   : > { %579 = vrot.lane.b32.xlu0 %v2641_v24, %s2502_s9 }
  0x34   : > { %v520_v13 = vsel %vm482_vm0, %v518_v6, %v519_v5  ;;  %v522_v27 = vsel %vm482_vm0, %v519_v5, %v521_v21 }
  0x35   : > { %633 = vrot.lane.b32.xlu1 %v497_v29, %s2503_s11 }
  0x37   : > { %631 = vrot.lane.b32.xlu0 %v495_v31, %s2503_s11 }
  0x39   : > { %1032 = vrot.lane.b32.xlu1 %v496_v28, %s2503_s11 }
  0x3b   : > { %1008 = vrot.lane.b32.xlu0 %v2644_v25, %s2502_s9 }
  0x3d   : > { %533 = vrot.lane.b32.xlu1 %v497_v29, %s2504_s16 }
  0x3f   : > { %531 = vrot.lane.b32.xlu0 %v495_v31, %s2504_s16  ;;  %v2823_v31 = vld [vmem:[%s2581_s8 + $0xb8] sm:$0x3] }
  0x40   : > { %v2830_v35 = vrot.slane %v2823_v31, 1 }
  0x41   : > { %583 = vrot.lane.b32.xlu1 %v2667_v32, %s2502_s9 }
  0x42   : > { %v626_v43 = vsel %vm482_vm0, %v623_v34, %v2830_v35 }
  0x43   : > { %581 = vrot.lane.b32.xlu0 %v2670_v33, %s2502_s9 }
  0x45   : > { %635 = vrot.lane.b32.xlu1 %v500_v36, %s2503_s11 }
  0x47   : > { %986 = vrot.lane.b32.xlu0 %v496_v28, %s2504_s16  ;;  %v2817_v28 = vld [vmem:[%s2581_s8 + $0xa8] sm:$0xff]  ;;  %s2841_s8 = scalar_select %p451_p11, 1, 0 }
  0x48   : > { %v622_v50 = vrot.slane %v2817_v28, 1 }
  0x49   : > { %1010 = vrot.lane.b32.xlu1 %v2684_v37, %s2502_s9 }
  0x4b   : > { %637 = vrot.lane.b32.xlu0 %v502_v39, %s2503_s11 }
  0x4d   : > { %535 = vrot.lane.b32.xlu1 %v500_v36, %s2504_s16 }
  0x4f   : > { %1034 = vrot.lane.b32.xlu0 %v501_v38, %s2503_s11 }
  0x51   : > { %585 = vrot.lane.b32.xlu1 %v2695_v40, %s2502_s9 }
  0x53   : > { %537 = vrot.lane.b32.xlu0 %v502_v39, %s2504_s16 }
  0x55   : > { %988 = vrot.lane.b32.xlu1 %v501_v38, %s2504_s16 }
  0x57   : > { %587 = vrot.lane.b32.xlu0 %v2698_v41, %s2502_s9 }
  0x59   : > { %641 = vrot.lane.b32.xlu1 %v507_v45, %s2503_s11 }
  0x5b   : > { %639 = vrot.lane.b32.xlu0 %v505_v47, %s2503_s11 }
  0x5d   : > { %1036 = vrot.lane.b32.xlu1 %v506_v44, %s2503_s11 }
  0x5f   : > { %1012 = vrot.lane.b32.xlu0 %v2701_v42, %s2502_s9 }
  0x61   : > { %541 = vrot.lane.b32.xlu1 %v507_v45, %s2504_s16 }
  0x63   : > { %539 = vrot.lane.b32.xlu0 %v505_v47, %s2504_s16 }
  0x65   : > { %591 = vrot.lane.b32.xlu1 %v2719_v48, %s2502_s9 }
  0x67   : > { %589 = vrot.lane.b32.xlu0 %v2722_v49, %s2502_s9 }
  0x69   : > { %643 = vrot.lane.b32.xlu1 %v510_v52, %s2503_s11 }
  0x6b   : > { %990 = vrot.lane.b32.xlu0 %v506_v44, %s2504_s16 }
  0x6d   : > { %1014 = vrot.lane.b32.xlu1 %v2736_v53, %s2502_s9 }
  0x6f   : > { %645 = vrot.lane.b32.xlu0 %v512_v55, %s2503_s11 }
  0x71   : > { %543 = vrot.lane.b32.xlu1 %v510_v52, %s2504_s16 }
  0x73   : > { %1038 = vrot.lane.b32.xlu0 %v511_v54, %s2503_s11 }
  0x75   : > { %593 = vrot.lane.b32.xlu1 %v2747_v56, %s2502_s9 }
  0x77   : > { %545 = vrot.lane.b32.xlu0 %v512_v55, %s2504_s16 }
  0x79   : > { %992 = vrot.lane.b32.xlu1 %v511_v54, %s2504_s16 }
  0x7b   : > { %595 = vrot.lane.b32.xlu0 %v2750_v57, %s2502_s9 }
  0x7d   : > { %649 = vrot.lane.b32.xlu1 %v517_v61, %s2503_s11 }
  0x7f   : > { %647 = vrot.lane.b32.xlu0 %v515_v63, %s2503_s11 }
  0x81   : > { %1040 = vrot.lane.b32.xlu1 %v516_v60, %s2503_s11 }
  0x83   : > { %1016 = vrot.lane.b32.xlu0 %v2753_v58, %s2502_s9 }
  0x85   : > { %549 = vrot.lane.b32.xlu1 %v517_v61, %s2504_s16  ;;  %v624_v61 = vsel %vm482_vm0, %v622_v50, %v623_v34 }
  0x87   : > { %547 = vrot.lane.b32.xlu0 %v515_v63, %s2504_s16 }
  0x89   : > { %599 = vrot.lane.b32.xlu1 %v2771_v3, %s2502_s9 }
  0x8b   : > { %v574_v14 = vpop.permute.xlu1 %573  ;;  %597 = vrot.lane.b32.xlu0 %v2774_v4, %s2502_s9 }
  0x8d   : > { %651 = vrot.lane.b32.xlu1 %v520_v13, %s2503_s11  ;;  %v1031_v18 = vpop.permute.xlu0 %1030 }
  0x8f   : > { %v576_v19 = vpop.permute.xlu1 %575  ;;  %994 = vrot.lane.b32.xlu0 %v516_v60, %s2504_s16 }
  0x91   : > { %1018 = vrot.lane.b32.xlu1 %v2806_v16, %s2502_s9  ;;  %v630_v26 = vpop.permute.xlu0 %629 }
  0x93   : > { %v1007_v22 = vpop.permute.xlu1 %1006  ;;  %653 = vrot.lane.b32.xlu0 %v522_v27, %s2503_s11 }
  0x95   : > { %551 = vrot.lane.b32.xlu1 %v520_v13, %s2504_s16  ;;  %v983_v36 = vpop.permute.xlu0 %982 }
  0x96   : > { %v1054_v39 = vsel %vm675_vm2, %v2626_v17, %v983_v36 }
  0x97   : > { %v628_v29 = vpop.permute.xlu1 %627  ;;  %1042 = vrot.lane.b32.xlu0 %v521_v21, %s2503_s11  ;;  %v1062_v47 = vsel %vm692_vm3, %v1054_v39, %v1007_v22 }
  0x99   : > { %601 = vrot.lane.b32.xlu1 %v2817_v28, %s2502_s9  ;;  %v524_v44 = vpop.permute.xlu0 %523 }
  0x9a   : > { %v676_v46 = vsel %vm675_vm2, %v2624_v15, %v524_v44  ;;  %v1070_v15 = vsel %vm709_vm5, %v1062_v47, %v1031_v18 }
  0x9b   : > { %v528_v38 = vpop.permute.xlu1 %527  ;;  %553 = vrot.lane.b32.xlu0 %v522_v27, %s2504_s16  ;;  %v693_v17 = vsel %vm692_vm3, %v676_v46, %v574_v14  ;;  %v1089_v62 = vrot.slane %v1070_v15, 1 }
  0x9c   : > { %v710_v51 = vsel %vm709_vm5, %v693_v17, %v628_v29 }
  0x9d   : > { %996 = vrot.lane.b32.xlu1 %v521_v21, %s2504_s16  ;;  %v526_v52 = vpop.permute.xlu0 %525  ;;  %2279 = vmatprep.mubr.msk.f32.mxu0 %vm728_vm4, %v710_v51  ;;  %v1086_v63 = vrot.slane %v710_v51, 1  ;;  %v678_v21 = vsel %vm675_vm2, %v2584_v0, %v528_v38  ;;  %v443_v38 = vld [vmem:[%s390_s25 + $0x10] sm:$0x3] }
  0x9e   : > { %v677_v55 = vsel %vm675_vm2, %v2630_v20, %v526_v52 }
  0x9f   : > { %v578_v45 = vpop.permute.xlu1 %577  ;;  %v694_v59 = vsel %vm692_vm3, %v677_v55, %v576_v19  ;;  %603 = vrot.lane.b32.xlu0 %v2820_v30, %s2502_s9  ;;  %v1382_v19 = vrot.slane %v2461_v7, 1 }
  0xa0   : > { %v711_v60 = vsel %vm709_vm5, %v694_v59, %v630_v26  ;;  %v453_v26 = vstv %s2841_s8  ;;  %v695_v27 = vsel %vm692_vm3, %v678_v21, %v578_v45 }
  0xa1   : > { %657 = vrot.lane.b32.xlu1 %v626_v43, %s2503_s11  ;;  %v530_v5 = vpop.permute.xlu0 %529  ;;  %2280 = vmatmul.mubr.msk.f32.vlgmr.msra.gmra.mrb[0].mxu0 %vm728_vm4, %v711_v60  ;;  %v1087_v20 = vrot.slane %v711_v60, 1  ;;  %vm454_vm6 = vcmp.eq.s32.totalorder %v453_v26, 1 }
  0xa2   : > { %2398 = vmatpush3.bf16.msra.mxu0 %v2786_v9  ;;  %v679_v13 = vsel %vm675_vm2, %v2590_v2, %v530_v5  ;;  %v1381_v9 = vrot.slane %v2458_v11, 1  ;;  %v457_v46 = vsel %vm454_vm6, 0.0, %v443_v38 }
  0xa3   : > { %v985_v54 = vpop.permute.xlu1 %984  ;;  %655 = vrot.lane.b32.xlu0 %v624_v61, %s2503_s11  ;;  %v1088_v8 = vsel %vm482_vm0, %v1086_v63, %v1087_v20  ;;  %v1090_v10 = vsel %vm482_vm0, %v1087_v20, %v1089_v62  ;;  %v1384_v52 = vrot.slane %v457_v46, 1 }
  0xa4   : > { %2307 = vmatprep.mubr.msk.f32.mxu1 %vm728_vm4, %v1088_v8  ;;  %v1383_v36 = vsel %vm482_vm0, %v1381_v9, %v1382_v19 }
  0xa5   : > { %1044 = vrot.lane.b32.xlu1 %v2830_v35, %s2503_s11  ;;  %v580_v14 = vpop.permute.xlu0 %579  ;;  %2308 = vmatmul.mubr.msk.f32.vlgmr.msra.gmra.mrb[0].mxu1 %vm728_vm4, %v1090_v10  ;;  %v1385_v55 = vsel %vm482_vm0, %v1382_v19, %v1384_v52 }
  0xa6   : > { %v696_v22 = vsel %vm692_vm3, %v679_v13, %v580_v14  ;;  %2402 = vmatpush3.bf16.msra.mxu1 %v2798_v12 }
  0xa7   : > { %v634_v6 = vpop.permute.xlu1 %633  ;;  %1020 = vrot.lane.b32.xlu0 %v2823_v31, %s2502_s9 }
  0xa8   : > { %v2889_v2 = vsel %vm709_vm5, %v696_v22, %v634_v6 }
  0xa9   : > { %1368 = vrot.lane.b32.xlu1 %v626_v43, %s2504_s16  ;;  %v632_v29 = vpop.permute.xlu0 %631  ;;  %v1092_v12 = vrot.slane %v2889_v2, 1  ;;  %v1055_v43 = vsel %vm675_vm2, %v2587_v1, %v985_v54 }
  0xaa   : > { %v2894_v0 = vsel %vm709_vm5, %v695_v27, %v632_v29 }
  0xab   : > { %v1033_v18 = vpop.permute.xlu1 %1032  ;;  %v1091_v39 = vrot.slane %v2894_v0, 1  ;;  %2282 = vmatprep.mubr.msk.f32.mxu0 %vm728_vm4, %v2894_v0  ;;  %1366 = vrot.lane.b32.xlu0 %v624_v61, %s2504_s16 }
  0xac   : > { %2283 = vmatmul.mubr.msk.f32.gmra.mrb[2].mxu0 %vm728_vm4, %v2889_v2 }
  0xad   : > { %1376 = vrot.lane.b32.xlu1 %v2461_v7, %s2502_s9  ;;  %v1009_v44 = vpop.permute.xlu0 %1008  ;;  %v2907_v45 = vsel %vm482_vm0, %v1091_v39, %v1092_v12 }
  0xae   : > { %v1063_v17 = vsel %vm692_vm3, %v1055_v43, %v1009_v44  ;;  %2310 = vmatprep.mubr.msk.f32.mxu1 %vm728_vm4, %v2907_v45 }
  0xaf   : > { %v534_v34 = vpop.permute.xlu1 %533  ;;  %v1071_v50 = vsel %vm709_vm5, %v1063_v17, %v1033_v18  ;;  %1374 = vrot.lane.b32.xlu0 %v2458_v11, %s2502_s9 }
  0xb0   : > { %v1094_v51 = vrot.slane %v1071_v50, 1 }
  0xb1   : > { %1386 = vrot.lane.b32.xlu1 %v1383_v36, %s2503_s11  ;;  %v532_v1 = vpop.permute.xlu0 %531 }
  0xb2   : > { %v2916_v15 = vsel %vm482_vm0, %v1092_v12, %v1094_v51  ;;  %v680_v59 = vsel %vm675_vm2, %v2637_v23, %v532_v1 }
  0xb3   : > { %v584_v47 = vpop.permute.xlu1 %583  ;;  %2311 = vmatmul.mubr.msk.f32.gmra.mrb[2].mxu1 %vm728_vm4, %v2916_v15  ;;  %1612 = vrot.lane.b32.xlu0 %v2830_v35, %s2504_s16  ;;  %v681_v35 = vsel %vm675_vm2, %v2641_v24, %v534_v34  ;;  %s2125_s16 = sshll.u32 %s3288_s19, 7 }
  0xb4   : > { %v698_v23 = vsel %vm692_vm3, %v681_v35, %v584_v47 }
  0xb5   : > { %1615 = vrot.lane.b32.xlu1 %v457_v46, %s2502_s9  ;;  %v582_v60 = vpop.permute.xlu0 %581  ;;  %s2123_s9 = sshll.u32 %s2484_s18, 4  ;;  %s3300_s18 = smov (!%p408_p13, %s2484_s18), 1 }
  0xb6   : > { %v697_v62 = vsel %vm692_vm3, %v680_v59, %v582_v60  ;;  %p398_p12 = scmp.lt.s32.totalorder %s2123_s9, 31  ;;  %s411_s7 = sadd.s32 %s2127_s6, %s3300_s18 }
  0xb7   : > { %v636_v54 = vpop.permute.xlu1 %635  ;;  %1388 = vrot.lane.b32.xlu0 %v1385_v55, %s2503_s11  ;;  %s2128_s10 = sshll.u32 %s411_s7, 1 }
  0xb8   : > { %v2927_v63 = vsel %vm709_vm5, %v697_v62, %v636_v54  ;;  %s3298_s9 = smov (!%p398_p12, %s2123_s9), 31  ;;  %s413_s19 = scalar_lea.vmem %s3276_s5, %s2128_s10 }
  0xb9   : > { %2285 = vmatprep.mubr.msk.f32.mxu0 %vm728_vm4, %v2927_v63  ;;  %v987_v5 = vpop.permute.xlu0 %986  ;;  %v1096_v11 = vrot.slane %v2927_v63, 1 }
  0xba   : > { %v1056_v8 = vsel %vm675_vm2, %v2644_v25, %v987_v5 }
  0xbb   : > { %v1011_v61 = vpop.permute.xlu1 %1010  ;;  %1618 = vrot.lane.b32.xlu0 %v1384_v52, %s2503_s11  ;;  %s2124_s11 = sshll.u32 %s3298_s9, 2 }
  0xbc   : > { %v1064_v24 = vsel %vm692_vm3, %v1056_v8, %v1011_v61  ;;  %s402_s14 = sadd.s32 %s2125_s16, %s2124_s11 }
  0xbd   : > { %v638_v6 = vpop.permute.xlu0 %637  ;;  %s2126_s26 = sshll.u32 %s402_s14, 3 }
  0xbe   : > { %v2939_v10 = vsel %vm709_vm5, %v698_v23, %v638_v6  ;;  %s3178_s30 = scalar_lea.vmem %s3275_s4, %s2126_s26 }
  0xbf   : > { %v536_v20 = vpop.permute.xlu1 %535  ;;  %v1097_v13 = vrot.slane %v2939_v10, 1  ;;  %2286 = vmatmul.mubr.msk.f32.gmra.mrb[4].mxu0 %vm728_vm4, %v2939_v10 }
  0xc0   : > { %v682_v36 = vsel %vm675_vm2, %v2670_v33, %v536_v20 }
  0xc1   : > { %v1035_v14 = vpop.permute.xlu0 %1034  ;;  %v2947_v18 = vsel %vm482_vm0, %v1096_v11, %v1097_v13 }
  0xc2   : > { %v1072_v19 = vsel %vm709_vm5, %v1064_v24, %v1035_v14  ;;  %2313 = vmatprep.mubr.msk.f32.mxu1 %vm728_vm4, %v2947_v18 }
  0xc3   : > { %v586_v7 = vpop.permute.xlu1 %585  ;;  %v1099_v25 = vrot.slane %v1072_v19, 1 }
  0xc4   : > { %v699_v39 = vsel %vm692_vm3, %v682_v36, %v586_v7 }
  0xc5   : > { %v538_v21 = vpop.permute.xlu0 %537  ;;  %v2953_v22 = vsel %vm482_vm0, %v1097_v13, %v1099_v25 }
  0xc6   : > { %2314 = vmatmul.mubr.msk.f32.gmra.mrb[4].mxu1 %vm728_vm4, %v2953_v22  ;;  %v683_v27 = vsel %vm675_vm2, %v2667_v32, %v538_v21 }
  0xc7   : > { %v989_v9 = vpop.permute.xlu1 %988 }
  0xc8   : > { %v1057_v33 = vsel %vm675_vm2, %v2684_v37, %v989_v9 }
  0xc9   : > { %v588_v29 = vpop.permute.xlu0 %587 }
  0xca   : > { %v700_v38 = vsel %vm692_vm3, %v683_v27, %v588_v29 }
  0xcb   : > { %v642_v26 = vpop.permute.xlu1 %641 }
  0xcc   : > { %v2963_v12 = vsel %vm709_vm5, %v700_v38, %v642_v26 }
  0xcd   : > { %v640_v43 = vpop.permute.xlu0 %639  ;;  %v1102_v47 = vrot.slane %v2963_v12, 1 }
  0xce   : > { %v2967_v46 = vsel %vm709_vm5, %v699_v39, %v640_v43 }
  0xcf   : > { %v1037_v34 = vpop.permute.xlu1 %1036  ;;  %v1101_v32 = vrot.slane %v2967_v46, 1  ;;  %2288 = vmatprep.mubr.msk.f32.mxu0 %vm728_vm4, %v2967_v46 }
  0xd0   : > { %2289 = vmatmul.mubr.msk.f32.gmra.mrb[6].mxu0 %vm728_vm4, %v2963_v12 }
  0xd1   : > { %v1013_v17 = vpop.permute.xlu0 %1012  ;;  %v2978_v50 = vsel %vm482_vm0, %v1101_v32, %v1102_v47 }
  0xd2   : > { %v1065_v52 = vsel %vm692_vm3, %v1057_v33, %v1013_v17  ;;  %2316 = vmatprep.mubr.msk.f32.mxu1 %vm728_vm4, %v2978_v50 }
  0xd3   : > { %v542_v44 = vpop.permute.xlu1 %541  ;;  %v1073_v1 = vsel %vm709_vm5, %v1065_v52, %v1037_v34 }
  0xd4   : > { %v1104_v54 = vrot.slane %v1073_v1, 1  ;;  %v685_v6 = vsel %vm675_vm2, %v2698_v41, %v542_v44 }
  0xd5   : > { %v540_v55 = vpop.permute.xlu0 %539 }
  0xd6   : > { %v2985_v60 = vsel %vm482_vm0, %v1102_v47, %v1104_v54  ;;  %v684_v37 = vsel %vm675_vm2, %v2695_v40, %v540_v55 }
  0xd7   : > { %v592_v51 = vpop.permute.xlu1 %591  ;;  %2317 = vmatmul.mubr.msk.f32.gmra.mrb[6].mxu1 %vm728_vm4, %v2985_v60 }
  0xd8   : > { %v702_v7 = vsel %vm692_vm3, %v685_v6, %v592_v51 }
  0xd9   : > { %v590_v61 = vpop.permute.xlu0 %589 }
  0xda   : > { %v701_v5 = vsel %vm692_vm3, %v684_v37, %v590_v61 }
  0xdb   : > { %v644_v59 = vpop.permute.xlu1 %643 }
  0xdc   : > { %v2993_v20 = vsel %vm709_vm5, %v701_v5, %v644_v59 }
  0xdd   : > { %2291 = vmatprep.mubr.msk.f32.mxu0 %vm728_vm4, %v2993_v20  ;;  %v991_v35 = vpop.permute.xlu0 %990  ;;  %v1106_v24 = vrot.slane %v2993_v20, 1 }
  0xde   : > { %v1058_v40 = vsel %vm675_vm2, %v2701_v42, %v991_v35 }
  0xdf   : > { %v1015_v62 = vpop.permute.xlu1 %1014 }
  0xe0   : > { %v1066_v9 = vsel %vm692_vm3, %v1058_v40, %v1015_v62 }
  0xe1   : > { %v646_v8 = vpop.permute.xlu0 %645 }
  0xe2   : > { %v3003_v13 = vsel %vm709_vm5, %v702_v7, %v646_v8 }
  0xe3   : > { %v544_v23 = vpop.permute.xlu1 %543  ;;  %v1107_v14 = vrot.slane %v3003_v13, 1  ;;  %2292 = vmatmul.mubr.msk.f32.gmra.mrb[8].mxu0 %vm728_vm4, %v3003_v13 }
  0xe4   : > { %v686_v39 = vsel %vm675_vm2, %v2722_v49, %v544_v23 }
  0xe5   : > { %v1039_v41 = vpop.permute.xlu0 %1038  ;;  %v3011_v19 = vsel %vm482_vm0, %v1106_v24, %v1107_v14 }
  0xe6   : > { %v1074_v21 = vsel %vm709_vm5, %v1066_v9, %v1039_v41  ;;  %2319 = vmatprep.mubr.msk.f32.mxu1 %vm728_vm4, %v3011_v19 }
  0xe7   : > { %v594_v11 = vpop.permute.xlu1 %593  ;;  %v1109_v42 = vrot.slane %v1074_v21, 1 }
  0xe8   : > { %v703_v47 = vsel %vm692_vm3, %v686_v39, %v594_v11 }
  0xe9   : > { %v546_v26 = vpop.permute.xlu0 %545  ;;  %v3017_v27 = vsel %vm482_vm0, %v1107_v14, %v1109_v42 }
  0xea   : > { %2320 = vmatmul.mubr.msk.f32.gmra.mrb[8].mxu1 %vm728_vm4, %v3017_v27  ;;  %v687_v34 = vsel %vm675_vm2, %v2719_v48, %v546_v26 }
  0xeb   : > { %v993_v25 = vpop.permute.xlu1 %992 }
  0xec   : > { %v1059_v49 = vsel %vm675_vm2, %v2736_v53, %v993_v25 }
  0xed   : > { %v596_v36 = vpop.permute.xlu0 %595 }
  0xee   : > { %v704_v43 = vsel %vm692_vm3, %v687_v34, %v596_v36 }
  0xef   : > { %v650_v29 = vpop.permute.xlu1 %649 }
  0xf0   : > { %v3027_v44 = vsel %vm709_vm5, %v704_v43, %v650_v29 }
  0xf1   : > { %v648_v32 = vpop.permute.xlu0 %647  ;;  %v1112_v51 = vrot.slane %v3027_v44, 1 }
  0xf2   : > { %v3031_v17 = vsel %vm709_vm5, %v703_v47, %v648_v32 }
  0xf3   : > { %v1041_v38 = vpop.permute.xlu1 %1040  ;;  %v1111_v48 = vrot.slane %v3031_v17, 1  ;;  %2294 = vmatprep.mubr.msk.f32.mxu0 %vm728_vm4, %v3031_v17 }
  0xf4   : > { %2295 = vmatmul.mubr.msk.f32.gmra.mrb[10].mxu0 %vm728_vm4, %v3027_v44 }
  0xf5   : > { %v1017_v52 = vpop.permute.xlu0 %1016  ;;  %v3042_v1 = vsel %vm482_vm0, %v1111_v48, %v1112_v51 }
  0xf6   : > { %v1067_v55 = vsel %vm692_vm3, %v1059_v49, %v1017_v52  ;;  %2322 = vmatprep.mubr.msk.f32.mxu1 %vm728_vm4, %v3042_v1 }
  0xf7   : > { %v550_v33 = vpop.permute.xlu1 %549  ;;  %v1075_v59 = vsel %vm709_vm5, %v1067_v55, %v1041_v38 }
  0xf8   : > { %v1114_v37 = vrot.slane %v1075_v59, 1  ;;  %v689_v40 = vsel %vm675_vm2, %v2750_v57, %v550_v33 }
  0xf9   : > { %v548_v61 = vpop.permute.xlu0 %547 }
  0xfa   : > { %v3049_v5 = vsel %vm482_vm0, %v1112_v51, %v1114_v37  ;;  %v688_v53 = vsel %vm675_vm2, %v2747_v56, %v548_v61 }
  0xfb   : > { %v600_v54 = vpop.permute.xlu1 %599  ;;  %2323 = vmatmul.mubr.msk.f32.gmra.mrb[10].mxu1 %vm728_vm4, %v3049_v5 }
  0xfc   : > { %v706_v24 = vsel %vm692_vm3, %v689_v40, %v600_v54 }
  0xfd   : > { %v598_v35 = vpop.permute.xlu0 %597 }
  0xfe   : > { %v705_v6 = vsel %vm692_vm3, %v688_v53, %v598_v35 }
  0xff   : > { %v652_v62 = vpop.permute.xlu1 %651 }
 0x100   : > { %v3057_v7 = vsel %vm709_vm5, %v705_v6, %v652_v62 }
 0x101   : > { %2297 = vmatprep.mubr.msk.f32.mxu0 %vm728_vm4, %v3057_v7  ;;  %v995_v8 = vpop.permute.xlu0 %994  ;;  %v1116_v25 = vrot.slane %v3057_v7, 1 }
 0x102   : > { %v1060_v56 = vsel %vm675_vm2, %v2753_v58, %v995_v8 }
 0x103   : > { %v1019_v23 = vpop.permute.xlu1 %1018 }
 0x104   : > { %v1068_v42 = vsel %vm692_vm3, %v1060_v56, %v1019_v23 }
 0x105   : > { %v654_v14 = vpop.permute.xlu0 %653 }
 0x106   : > { %v3067_v41 = vsel %vm709_vm5, %v706_v24, %v654_v14 }
 0x107   : > { %v552_v11 = vpop.permute.xlu1 %551  ;;  %v1117_v21 = vrot.slane %v3067_v41, 1  ;;  %2298 = vmatmul.mubr.msk.f32.gmra.mrb[12].mxu0 %vm728_vm4, %v3067_v41 }
 0x108   : > { %v690_v32 = vsel %vm675_vm2, %v2774_v4, %v552_v11 }
 0x109   : > { %v1043_v57 = vpop.permute.xlu0 %1042  ;;  %v3075_v26 = vsel %vm482_vm0, %v1116_v25, %v1117_v21 }
 0x10a   : > { %v1076_v29 = vsel %vm709_vm5, %v1068_v42, %v1043_v57  ;;  %2325 = vmatprep.mubr.msk.f32.mxu1 %vm728_vm4, %v3075_v26 }
 0x10b   : > { %v602_v9 = vpop.permute.xlu1 %601  ;;  %v1119_v58 = vrot.slane %v1076_v29, 1 }
 0x10c   : > { %v707_v48 = vsel %vm692_vm3, %v690_v32, %v602_v9 }
 0x10d   : > { %v554_v36 = vpop.permute.xlu0 %553  ;;  %v3081_v38 = vsel %vm482_vm0, %v1117_v21, %v1119_v58 }
 0x10e   : > { %2326 = vmatmul.mubr.msk.f32.gmra.mrb[12].mxu1 %vm728_vm4, %v3081_v38  ;;  %v691_v39 = vsel %vm675_vm2, %v2771_v3, %v554_v36 }
 0x10f   : > { %v997_v34 = vpop.permute.xlu1 %996 }
 0x110   : > { %v1061_v59 = vsel %vm675_vm2, %v2806_v16, %v997_v34 }
 0x111   : > { %v604_v43 = vpop.permute.xlu0 %603 }
 0x112   : > { %v708_v33 = vsel %vm692_vm3, %v691_v39, %v604_v43 }
 0x113   : > { %v658_v47 = vpop.permute.xlu1 %657 }
 0x114   : > { %v725_v51 = vsel %vm709_vm5, %v708_v33, %v658_v47 }
 0x115   : > { %v656_v49 = vpop.permute.xlu0 %655  ;;  %v1122_v54 = vrot.slane %v725_v51, 1 }
 0x116   : > { %v724_v52 = vsel %vm709_vm5, %v707_v48, %v656_v49 }
 0x117   : > { %v1121_v55 = vrot.slane %v724_v52, 1  ;;  %2300 = vmatprep.mubr.msk.f32.mxu0 %vm728_vm4, %v724_v52  ;;  %v1045_v3 = vpop.permute.xlu1 %1044 }
 0x118   : > { %2301 = vmatmul.mubr.msk.f32.gmra.mrb[14].mxu0 %vm728_vm4, %v725_v51 }
 0x119   : > { %v1021_v4 = vpop.permute.xlu0 %1020  ;;  %2335 = vmatprep.mubr.msk.f32.mxu0 %vm728_vm4, %v2894_v0  ;;  %v1123_v37 = vsel %vm482_vm0, %v1121_v55, %v1122_v54 }
 0x11a   : > { %v1069_v61 = vsel %vm692_vm3, %v1061_v59, %v1021_v4  ;;  %2328 = vmatprep.mubr.msk.f32.mxu1 %vm728_vm4, %v1123_v37 }
 0x11b   : > { %v1077_v62 = vsel %vm709_vm5, %v1069_v61, %v1045_v3  ;;  %v1369_v0 = vpop.permute.xlu1 %1368 }
 0x11c   : > { %v1124_v53 = vrot.slane %v1077_v62, 1  ;;  %2336 = vmatmul.mubr.msk.f32.vlgmr.msra.gmra.mrb[16].mxu0 %vm728_vm4, %v2889_v2 }
 0x11d   : > { %2338 = vmatprep.mubr.msk.f32.mxu0 %vm728_vm4, %v2927_v63  ;;  %v1367_v16 = vpop.permute.xlu0 %1366 }
 0x11e   : > { %v1125_v35 = vsel %vm482_vm0, %v1122_v54, %v1124_v53  ;;  %v1392_v63 = vsel %vm675_vm2, %v2817_v28, %v1367_v16 }
 0x11f   : > { %2329 = vmatmul.mubr.msk.f32.gmra.mrb[14].mxu1 %vm728_vm4, %v1125_v35  ;;  %v1377_v2 = vpop.permute.xlu1 %1376 }
 0x120   : > { %2339 = vmatmul.mubr.msk.f32.gmra.mrb[18].mxu0 %vm728_vm4, %v2939_v10  ;;  %2363 = vmatprep.mubr.msk.f32.mxu1 %vm728_vm4, %v2907_v45  ;;  %v1393_v10 = vsel %vm675_vm2, %v2820_v30, %v1369_v0 }
 0x121   : > { %2341 = vmatprep.mubr.msk.f32.mxu0 %vm728_vm4, %v2967_v46  ;;  %v1375_v23 = vpop.permute.xlu0 %1374 }
 0x123   : > { %2364 = vmatmul.mubr.msk.f32.vlgmr.msra.gmra.mrb[16].mxu1 %vm728_vm4, %v2916_v15  ;;  %v1387_v15 = vpop.permute.xlu1 %1386 }
 0x124   : > { %2342 = vmatmul.mubr.msk.f32.gmra.mrb[20].mxu0 %vm728_vm4, %v2963_v12  ;;  %2366 = vmatprep.mubr.msk.f32.mxu1 %vm728_vm4, %v2947_v18  ;;  %v1395_v12 = vsel %vm692_vm3, %v1393_v10, %v1377_v2 }
 0x125   : > { %2344 = vmatprep.mubr.msk.f32.mxu0 %vm728_vm4, %v2993_v20  ;;  %v1613_v45 = vpop.permute.xlu0 %1612 }
 0x126   : > { %v1621_v28 = vsel %vm675_vm2, %v2823_v31, %v1613_v45 }
 0x127   : > { %2367 = vmatmul.mubr.msk.f32.gmra.mrb[18].mxu1 %vm728_vm4, %v2953_v22  ;;  %v1394_v22 = vsel %vm692_vm3, %v1392_v63, %v1375_v23  ;;  %v1616_v46 = vpop.permute.xlu1 %1615 }
 0x128   : > { %2345 = vmatmul.mubr.msk.f32.gmra.mrb[22].mxu0 %vm728_vm4, %v3003_v13  ;;  %2369 = vmatprep.mubr.msk.f32.mxu1 %vm728_vm4, %v2978_v50  ;;  %v1396_v30 = vsel %vm709_vm5, %v1394_v22, %v1387_v15 }
 0x129   : > { %2347 = vmatprep.mubr.msk.f32.mxu0 %vm728_vm4, %v3031_v17  ;;  %v1389_v18 = vpop.permute.xlu0 %1388  ;;  %v1625_v31 = vrot.slane %v1396_v30, 1 }
 0x12a   : > { %v1397_v50 = vsel %vm709_vm5, %v1395_v12, %v1389_v18 }
 0x12b   : > { %2370 = vmatmul.mubr.msk.f32.gmra.mrb[20].mxu1 %vm728_vm4, %v2985_v60  ;;  %v1622_v60 = vsel %vm692_vm3, %v1621_v28, %v1616_v46  ;;  %v1626_v13 = vrot.slane %v1397_v50, 1 }
 0x12c   : > { %2348 = vmatmul.mubr.msk.f32.gmra.mrb[24].mxu0 %vm728_vm4, %v3027_v44  ;;  %2372 = vmatprep.mubr.msk.f32.mxu1 %vm728_vm4, %v3011_v19 }
 0x12d   : > { %2350 = vmatprep.mubr.msk.f32.mxu0 %vm728_vm4, %v3057_v7  ;;  %v1619_v20 = vpop.permute.xlu0 %1618  ;;  %v1627_v44 = vsel %vm482_vm0, %v1625_v31, %v1626_v13 }
 0x12e   : > { %v1623_v19 = vsel %vm709_vm5, %v1622_v60, %v1619_v20 }
 0x12f   : > { %2373 = vmatmul.mubr.msk.f32.gmra.mrb[22].mxu1 %vm728_vm4, %v3017_v27  ;;  %v1628_v27 = vrot.slane %v1623_v19, 1 }
 0x130   : > { %2351 = vmatmul.mubr.msk.f32.gmra.mrb[26].mxu0 %vm728_vm4, %v3067_v41  ;;  %2375 = vmatprep.mubr.msk.f32.mxu1 %vm728_vm4, %v3042_v1 }
 0x131   : > { %2353 = vmatprep.mubr.msk.f32.mxu0 %vm728_vm4, %v724_v52  ;;  %v1629_v17 = vsel %vm482_vm0, %v1626_v13, %v1628_v27 }
 0x133   : > { %2376 = vmatmul.mubr.msk.f32.gmra.mrb[24].mxu1 %vm728_vm4, %v3049_v5 }
 0x134   : > { %2354 = vmatmul.mubr.msk.f32.gmra.mrb[28].mxu0 %vm728_vm4, %v725_v51  ;;  %2378 = vmatprep.mubr.msk.f32.mxu1 %vm728_vm4, %v3075_v26 }
 0x135   : > { %2356 = vmatprep.mubr.msk.f32.mxu0 %vm728_vm4, %v1396_v30 }
 0x137   : > { %2379 = vmatmul.mubr.msk.f32.gmra.mrb[26].mxu1 %vm728_vm4, %v3081_v38 }
 0x138   : > { %2357 = vmatmul.mubr.msk.f32.gmra.mrb[30].mxu0 %vm728_vm4, %v1397_v50  ;;  %2381 = vmatprep.mubr.msk.f32.mxu1 %vm728_vm4, %v1123_v37 }
 0x13b   : > { %2382 = vmatmul.mubr.msk.f32.gmra.mrb[28].mxu1 %vm728_vm4, %v1125_v35 }
 0x13c   : > { %2384 = vmatprep.mubr.msk.f32.mxu1 %vm728_vm4, %v1627_v44 }
 0x13f   : > { %2385 = vmatmul.mubr.msk.f32.gmra.mrb[30].mxu1 %vm728_vm4, %v1629_v17 }
 0x174   : > { %v2281_v1 = vpop.f32.mrb[0].mxu0 }
 0x175   : > { %v945_v5 = vmul.f32 %v2281_v1, %v2281_v1  ;;  %1846 = vst [vmem:[%s3178_s30 + $0x8] sm:$0xff] %v2281_v1  ;;  %v843_v6 = vpop.f32.mrb[1].mxu0 }
 0x176   : > { %v922_v7 = vadd.f32 %v2281_v1, %v843_v6  ;;  %v944_v8 = vmul.f32 %v843_v6, %v843_v6  ;;  %1845 = vst [vmem:[%s3178_s30] sm:$0xff] %v843_v6 }
 0x178   : > { %v960_v11 = vadd.f32 %v945_v5, %v944_v8  ;;  %v2309_v40 = vpop.f32.mrb[0].mxu1 }
 0x179   : > { %v1329_v24 = vmul.f32 %v2309_v40, %v2309_v40  ;;  %1848 = vst [vmem:[%s3178_s30 + $0x18] sm:$0xff] %v2309_v40  ;;  %v1227_v14 = vpop.f32.mrb[1].mxu1 }
 0x17a   : > { %v1306_v9 = vadd.f32 %v2309_v40, %v1227_v14  ;;  %v1328_v56 = vmul.f32 %v1227_v14, %v1227_v14  ;;  %1847 = vst [vmem:[%s3178_s30 + $0x10] sm:$0xff] %v1227_v14 }
 0x17c   : > { %v1344_v41 = vadd.f32 %v1329_v24, %v1328_v56 }
 0x17f   : > { %v2284_v25 = vpop.f32.mrb[2].mxu0 }
 0x180   : > { %1854 = vst [vmem:[%s3178_s30 + $0x48] sm:$0xff] %v2284_v25  ;;  %v853_v21 = vpop.f32.mrb[3].mxu0  ;;  %v947_v26 = vmul.f32 %v2284_v25, %v2284_v25 }
 0x181   : > { %v923_v42 = vadd.f32 %v922_v7, %v853_v21  ;;  %v946_v57 = vmul.f32 %v853_v21, %v853_v21  ;;  %1853 = vst [vmem:[%s3178_s30 + $0x40] sm:$0xff] %v853_v21 }
 0x183   : > { %v961_v29 = vadd.f32 %v960_v11, %v946_v57  ;;  %v924_v58 = vadd.f32 %v2284_v25, %v923_v42 }
 0x185   : > { %v962_v34 = vadd.f32 %v961_v29, %v947_v26 }
 0x186   : > { %v2312_v36 = vpop.f32.mrb[2].mxu1 }
 0x187   : > { %1856 = vst [vmem:[%s3178_s30 + $0x58] sm:$0xff] %v2312_v36  ;;  %v1237_v38 = vpop.f32.mrb[3].mxu1  ;;  %v1331_v47 = vmul.f32 %v2312_v36, %v2312_v36 }
 0x188   : > { %v1307_v39 = vadd.f32 %v1306_v9, %v1237_v38  ;;  %v1330_v43 = vmul.f32 %v1237_v38, %v1237_v38  ;;  %1855 = vst [vmem:[%s3178_s30 + $0x50] sm:$0xff] %v1237_v38 }
 0x18a   : > { %v1345_v32 = vadd.f32 %v1344_v41, %v1330_v43  ;;  %v1308_v33 = vadd.f32 %v2312_v36, %v1307_v39 }
 0x18c   : > { %v1346_v51 = vadd.f32 %v1345_v32, %v1331_v47 }
 0x192   : > { %v2287_v48 = vpop.f32.mrb[4].mxu0 }
 0x193   : > { %1862 = vst [vmem:[%s3178_s30 + $0x88] sm:$0xff] %v2287_v48  ;;  %v863_v49 = vpop.f32.mrb[5].mxu0  ;;  %v949_v55 = vmul.f32 %v2287_v48, %v2287_v48 }
 0x194   : > { %v925_v52 = vadd.f32 %v924_v58, %v863_v49  ;;  %v948_v54 = vmul.f32 %v863_v49, %v863_v49  ;;  %1861 = vst [vmem:[%s3178_s30 + $0x80] sm:$0xff] %v863_v49 }
 0x196   : > { %v963_v3 = vadd.f32 %v962_v34, %v948_v54  ;;  %v926_v59 = vadd.f32 %v2287_v48, %v925_v52 }
 0x198   : > { %v964_v4 = vadd.f32 %v963_v3, %v949_v55 }
 0x199   : > { %v2315_v37 = vpop.f32.mrb[4].mxu1 }
 0x19a   : > { %1864 = vst [vmem:[%s3178_s30 + $0x98] sm:$0xff] %v2315_v37  ;;  %v1247_v61 = vpop.f32.mrb[5].mxu1  ;;  %v1333_v16 = vmul.f32 %v2315_v37, %v2315_v37 }
 0x19b   : > { %v1309_v62 = vadd.f32 %v1308_v33, %v1247_v61  ;;  %v1332_v53 = vmul.f32 %v1247_v61, %v1247_v61  ;;  %1863 = vst [vmem:[%s3178_s30 + $0x90] sm:$0xff] %v1247_v61 }
 0x19d   : > { %v1347_v35 = vadd.f32 %v1346_v51, %v1332_v53  ;;  %v1310_v0 = vadd.f32 %v2315_v37, %v1309_v62 }
 0x19f   : > { %v1348_v23 = vadd.f32 %v1347_v35, %v1333_v16 }
 0x1a3   : > { %v2290_v2 = vpop.f32.mrb[6].mxu0 }
 0x1a4   : > { %1870 = vst [vmem:[%s3178_s30 + $0xc8] sm:$0xff] %v2290_v2  ;;  %v873_v45 = vpop.f32.mrb[7].mxu0  ;;  %v951_v10 = vmul.f32 %v2290_v2, %v2290_v2 }
 0x1a5   : > { %v927_v15 = vadd.f32 %v926_v59, %v873_v45  ;;  %v950_v63 = vmul.f32 %v873_v45, %v873_v45  ;;  %1869 = vst [vmem:[%s3178_s30 + $0xc0] sm:$0xff] %v873_v45 }
 0x1a7   : > { %v965_v18 = vadd.f32 %v964_v4, %v950_v63  ;;  %v928_v22 = vadd.f32 %v2290_v2, %v927_v15 }
 0x1a9   : > { %v966_v12 = vadd.f32 %v965_v18, %v951_v10 }
 0x1aa   : > { %v2318_v28 = vpop.f32.mrb[6].mxu1 }
 0x1ab   : > { %1872 = vst [vmem:[%s3178_s30 + $0xd8] sm:$0xff] %v2318_v28  ;;  %v1257_v46 = vpop.f32.mrb[7].mxu1  ;;  %v1335_v60 = vmul.f32 %v2318_v28, %v2318_v28 }
 0x1ac   : > { %v1311_v30 = vadd.f32 %v1310_v0, %v1257_v46  ;;  %v1334_v50 = vmul.f32 %v1257_v46, %v1257_v46  ;;  %1871 = vst [vmem:[%s3178_s30 + $0xd0] sm:$0xff] %v1257_v46 }
 0x1ae   : > { %v1349_v20 = vadd.f32 %v1348_v23, %v1334_v50  ;;  %v1312_v31 = vadd.f32 %v2318_v28, %v1311_v30 }
 0x1b0   : > { %v1350_v13 = vadd.f32 %v1349_v20, %v1335_v60 }
 0x1b6   : > { %v2293_v19 = vpop.f32.mrb[8].mxu0 }
 0x1b7   : > { %1878 = vst [vmem:[%s3178_s30 + $0x108] sm:$0xff] %v2293_v19  ;;  %v883_v27 = vpop.f32.mrb[9].mxu0  ;;  %v953_v1 = vmul.f32 %v2293_v19, %v2293_v19 }
 0x1b8   : > { %v929_v44 = vadd.f32 %v928_v22, %v883_v27  ;;  %v952_v17 = vmul.f32 %v883_v27, %v883_v27  ;;  %1877 = vst [vmem:[%s3178_s30 + $0x100] sm:$0xff] %v883_v27 }
 0x1ba   : > { %v967_v5 = vadd.f32 %v966_v12, %v952_v17  ;;  %v930_v6 = vadd.f32 %v2293_v19, %v929_v44 }
 0x1bc   : > { %v968_v7 = vadd.f32 %v967_v5, %v953_v1 }
 0x1bd   : > { %v2321_v8 = vpop.f32.mrb[8].mxu1 }
 0x1be   : > { %1880 = vst [vmem:[%s3178_s30 + $0x118] sm:$0xff] %v2321_v8  ;;  %v1267_v11 = vpop.f32.mrb[9].mxu1  ;;  %v1337_v14 = vmul.f32 %v2321_v8, %v2321_v8 }
 0x1bf   : > { %v1313_v40 = vadd.f32 %v1312_v31, %v1267_v11  ;;  %v1336_v24 = vmul.f32 %v1267_v11, %v1267_v11  ;;  %1879 = vst [vmem:[%s3178_s30 + $0x110] sm:$0xff] %v1267_v11 }
 0x1c1   : > { %v1351_v9 = vadd.f32 %v1350_v13, %v1336_v24  ;;  %v1314_v56 = vadd.f32 %v2321_v8, %v1313_v40 }
 0x1c3   : > { %v1352_v41 = vadd.f32 %v1351_v9, %v1337_v14 }
 0x1c7   : > { %v2296_v25 = vpop.f32.mrb[10].mxu0 }
 0x1c8   : > { %1886 = vst [vmem:[%s3178_s30 + $0x148] sm:$0xff] %v2296_v25  ;;  %v893_v21 = vpop.f32.mrb[11].mxu0  ;;  %v955_v26 = vmul.f32 %v2296_v25, %v2296_v25 }
 0x1c9   : > { %v931_v42 = vadd.f32 %v930_v6, %v893_v21  ;;  %v954_v57 = vmul.f32 %v893_v21, %v893_v21  ;;  %1885 = vst [vmem:[%s3178_s30 + $0x140] sm:$0xff] %v893_v21 }
 0x1cb   : > { %v969_v29 = vadd.f32 %v968_v7, %v954_v57  ;;  %v932_v58 = vadd.f32 %v2296_v25, %v931_v42 }
 0x1cd   : > { %v970_v34 = vadd.f32 %v969_v29, %v955_v26 }
 0x1ce   : > { %v2324_v36 = vpop.f32.mrb[10].mxu1 }
 0x1cf   : > { %1888 = vst [vmem:[%s3178_s30 + $0x158] sm:$0xff] %v2324_v36  ;;  %v1277_v38 = vpop.f32.mrb[11].mxu1  ;;  %v1339_v47 = vmul.f32 %v2324_v36, %v2324_v36 }
 0x1d0   : > { %v1315_v39 = vadd.f32 %v1314_v56, %v1277_v38  ;;  %v1338_v43 = vmul.f32 %v1277_v38, %v1277_v38  ;;  %1887 = vst [vmem:[%s3178_s30 + $0x150] sm:$0xff] %v1277_v38 }
 0x1d2   : > { %v1353_v32 = vadd.f32 %v1352_v41, %v1338_v43  ;;  %v1316_v33 = vadd.f32 %v2324_v36, %v1315_v39 }
 0x1d4   : > { %v1354_v51 = vadd.f32 %v1353_v32, %v1339_v47 }
 0x1da   : > { %v2299_v48 = vpop.f32.mrb[12].mxu0 }
 0x1db   : > { %1894 = vst [vmem:[%s3178_s30 + $0x188] sm:$0xff] %v2299_v48  ;;  %v903_v49 = vpop.f32.mrb[13].mxu0  ;;  %v957_v55 = vmul.f32 %v2299_v48, %v2299_v48 }
 0x1dc   : > { %v933_v52 = vadd.f32 %v932_v58, %v903_v49  ;;  %v956_v54 = vmul.f32 %v903_v49, %v903_v49  ;;  %1893 = vst [vmem:[%s3178_s30 + $0x180] sm:$0xff] %v903_v49 }
 0x1de   : > { %v971_v3 = vadd.f32 %v970_v34, %v956_v54  ;;  %v934_v59 = vadd.f32 %v2299_v48, %v933_v52 }
 0x1e0   : > { %v972_v4 = vadd.f32 %v971_v3, %v957_v55 }
 0x1e1   : > { %v2327_v37 = vpop.f32.mrb[12].mxu1 }
 0x1e2   : > { %1896 = vst [vmem:[%s3178_s30 + $0x198] sm:$0xff] %v2327_v37  ;;  %v1287_v61 = vpop.f32.mrb[13].mxu1  ;;  %v1341_v16 = vmul.f32 %v2327_v37, %v2327_v37 }
 0x1e3   : > { %v1317_v62 = vadd.f32 %v1316_v33, %v1287_v61  ;;  %v1340_v53 = vmul.f32 %v1287_v61, %v1287_v61  ;;  %1895 = vst [vmem:[%s3178_s30 + $0x190] sm:$0xff] %v1287_v61 }
 0x1e5   : > { %v1355_v35 = vadd.f32 %v1354_v51, %v1340_v53  ;;  %v1318_v0 = vadd.f32 %v2327_v37, %v1317_v62 }
 0x1e7   : > { %v1356_v23 = vadd.f32 %v1355_v35, %v1341_v16 }
 0x1eb   : > { %v2302_v2 = vpop.f32.mrb[14].mxu0 }
 0x1ec   : > { %1902 = vst [vmem:[%s3178_s30 + $0x1c8] sm:$0xff] %v2302_v2  ;;  %v913_v45 = vpop.f32.mrb[15].mxu0  ;;  %v959_v10 = vmul.f32 %v2302_v2, %v2302_v2 }
 0x1ed   : > { %v935_v15 = vadd.f32 %v934_v59, %v913_v45  ;;  %v958_v63 = vmul.f32 %v913_v45, %v913_v45  ;;  %1901 = vst [vmem:[%s3178_s30 + $0x1c0] sm:$0xff] %v913_v45 }
 0x1ef   : > { %v936_v18 = vadd.f32 %v2302_v2, %v935_v15  ;;  %v973_v22 = vadd.f32 %v972_v4, %v958_v63  ;;  %v2337_v12 = vpop.f32.mrb[16].mxu0 }
 0x1f0   : > { %v1575_v28 = vmul.f32 %v2337_v12, %v2337_v12  ;;  %1850 = vst [vmem:[%s3178_s30 + $0x28] sm:$0xff] %v2337_v12  ;;  %v1473_v46 = vpop.f32.mrb[17].mxu0 }
 0x1f1   : > { %v937_v30 = vrot.slane %v936_v18, 4  ;;  %v974_v50 = vadd.f32 %v973_v22, %v959_v10  ;;  %v1552_v60 = vadd.f32 %v2337_v12, %v1473_v46  ;;  %v1574_v20 = vmul.f32 %v1473_v46, %v1473_v46  ;;  %1849 = vst [vmem:[%s3178_s30 + $0x20] sm:$0xff] %v1473_v46 }
 0x1f2   : > { %v2330_v31 = vpop.f32.mrb[14].mxu1 }
 0x1f3   : > { %v938_v13 = vadd.f32 %v937_v30, %v936_v18  ;;  %v975_v19 = vrot.slane %v974_v50, 4  ;;  %v1590_v27 = vadd.f32 %v1575_v28, %v1574_v20  ;;  %1904 = vst [vmem:[%s3178_s30 + $0x1d8] sm:$0xff] %v2330_v31  ;;  %v1297_v44 = vpop.f32.mrb[15].mxu1  ;;  %v2340_v17 = vpop.f32.mrb[18].mxu0  ;;  %v1343_v24 = vmul.f32 %v2330_v31, %v2330_v31 }
 0x1f4   : > { %v1319_v1 = vadd.f32 %v1318_v0, %v1297_v44  ;;  %v1342_v5 = vmul.f32 %v1297_v44, %v1297_v44  ;;  %1903 = vst [vmem:[%s3178_s30 + $0x1d0] sm:$0xff] %v1297_v44  ;;  %1858 = vst [vmem:[%s3178_s30 + $0x68] sm:$0xff] %v2340_v17  ;;  %v1483_v6 = vpop.f32.mrb[19].mxu0  ;;  %v1577_v34 = vmul.f32 %v2340_v17, %v2340_v17 }
 0x1f5   : > { %v939_v7 = vrot.slane %v938_v13, 2  ;;  %v976_v8 = vadd.f32 %v975_v19, %v974_v50  ;;  %v1553_v11 = vadd.f32 %v1552_v60, %v1483_v6  ;;  %v1576_v40 = vmul.f32 %v1483_v6, %v1483_v6  ;;  %1857 = vst [vmem:[%s3178_s30 + $0x60] sm:$0xff] %v1483_v6 }
 0x1f6   : > { %v1320_v14 = vadd.f32 %v2330_v31, %v1319_v1  ;;  %v1357_v9 = vadd.f32 %v1356_v23, %v1342_v5  ;;  %v2365_v56 = vpop.f32.mrb[16].mxu1 }
 0x1f7   : > { %v940_v41 = vadd.f32 %v939_v7, %v938_v13  ;;  %v977_v25 = vrot.slane %v976_v8, 2  ;;  %v1591_v21 = vadd.f32 %v1590_v27, %v1576_v40  ;;  %v1805_v42 = vmul.f32 %v2365_v56, %v2365_v56  ;;  %1852 = vst [vmem:[%s3178_s30 + $0x38] sm:$0xff] %v2365_v56  ;;  %v2343_v57 = vpop.f32.mrb[20].mxu0  ;;  %v1703_v26 = vpop.f32.mrb[17].mxu1 }
 0x1f8   : > { %v1321_v29 = vrot.slane %v1320_v14, 4  ;;  %v1358_v58 = vadd.f32 %v1357_v9, %v1343_v24  ;;  %1866 = vst [vmem:[%s3178_s30 + $0xa8] sm:$0xff] %v2343_v57  ;;  %v1782_v36 = vadd.f32 %v2365_v56, %v1703_v26  ;;  %1851 = vst [vmem:[%s3178_s30 + $0x30] sm:$0xff] %v1703_v26  ;;  %v1493_v38 = vpop.f32.mrb[21].mxu0  ;;  %v1804_v47 = vmul.f32 %v1703_v26, %v1703_v26 }
 0x1f9   : > { %v941_v39 = vrot.slane %v940_v41, 1  ;;  %v978_v43 = vadd.f32 %v977_v25, %v976_v8  ;;  %v1554_v32 = vadd.f32 %v2340_v17, %v1553_v11  ;;  %1865 = vst [vmem:[%s3178_s30 + $0xa0] sm:$0xff] %v1493_v38  ;;  %v1578_v48 = vmul.f32 %v1493_v38, %v1493_v38 }
 0x1fa   : > { %v1322_v33 = vadd.f32 %v1321_v29, %v1320_v14  ;;  %v1359_v51 = vrot.slane %v1358_v58, 4  ;;  %v1592_v49 = vadd.f32 %v1591_v21, %v1577_v34  ;;  %v2368_v52 = vpop.f32.mrb[18].mxu1  ;;  %v1820_v55 = vadd.f32 %v1805_v42, %v1804_v47 }
 0x1fb   : > { %v979_v54 = vrot.slane %v978_v43, 1  ;;  %v1555_v3 = vadd.f32 %v1554_v32, %v1493_v38  ;;  %1860 = vst [vmem:[%s3178_s30 + $0x78] sm:$0xff] %v2368_v52  ;;  %v2346_v59 = vpop.f32.mrb[22].mxu0  ;;  %v1713_v4 = vpop.f32.mrb[19].mxu1  ;;  %v1579_v62 = vmul.f32 %v2343_v57, %v2343_v57  ;;  %v942_v35 = vadd.f32 %v941_v39, %v940_v41 }
 0x1fc   : > { %v1323_v37 = vrot.slane %v1322_v33, 2  ;;  %v1360_v61 = vadd.f32 %v1359_v51, %v1358_v58  ;;  %v1593_v53 = vadd.f32 %v1592_v49, %v1578_v48  ;;  %1874 = vst [vmem:[%s3178_s30 + $0xe8] sm:$0xff] %v2346_v59  ;;  %1859 = vst [vmem:[%s3178_s30 + $0x70] sm:$0xff] %v1713_v4  ;;  %v1503_v16 = vpop.f32.mrb[23].mxu0  ;;  %v1807_v0 = vmul.f32 %v2368_v52, %v2368_v52 }
 0x1fd   : > { %v1783_v23 = vadd.f32 %v1782_v36, %v1713_v4  ;;  %v1806_v2 = vmul.f32 %v1713_v4, %v1713_v4  ;;  %1873 = vst [vmem:[%s3178_s30 + $0xe0] sm:$0xff] %v1503_v16  ;;  %v1556_v63 = vadd.f32 %v2343_v57, %v1555_v3  ;;  %v1580_v10 = vmul.f32 %v1503_v16, %v1503_v16 }
 0x1fe   : > { %v1324_v45 = vadd.f32 %v1323_v37, %v1322_v33  ;;  %v1361_v15 = vrot.slane %v1360_v61, 2  ;;  %v2371_v18 = vpop.f32.mrb[20].mxu1  ;;  %v980_v22 = vadd.f32 %v979_v54, %v978_v43  ;;  %v1594_v28 = vadd.f32 %v1593_v53, %v1579_v62 }
 0x1ff   : > { %v1821_v12 = vadd.f32 %v1820_v55, %v1806_v2  ;;  %1868 = vst [vmem:[%s3178_s30 + $0xb8] sm:$0xff] %v2371_v18  ;;  %v2349_v46 = vpop.f32.mrb[24].mxu0  ;;  %v1723_v30 = vpop.f32.mrb[21].mxu1  ;;  %v1784_v50 = vadd.f32 %v2368_v52, %v1783_v23  ;;  %v1581_v31 = vmul.f32 %v2346_v59, %v2346_v59  ;;  %v1557_v13 = vadd.f32 %v1556_v63, %v1503_v16 }
 0x200   : > { %v1325_v60 = vrot.slane %v1324_v45, 1  ;;  %v1362_v20 = vadd.f32 %v1361_v15, %v1360_v61  ;;  %1882 = vst [vmem:[%s3178_s30 + $0x128] sm:$0xff] %v2349_v46  ;;  %1867 = vst [vmem:[%s3178_s30 + $0xb0] sm:$0xff] %v1723_v30  ;;  %v1513_v19 = vpop.f32.mrb[25].mxu0  ;;  %v1595_v27 = vadd.f32 %v1594_v28, %v1580_v10  ;;  %v1808_v17 = vmul.f32 %v1723_v30, %v1723_v30 }
 0x201   : > { %v1785_v44 = vadd.f32 %v1784_v50, %v1723_v30  ;;  %v1822_v1 = vadd.f32 %v1821_v12, %v1807_v0  ;;  %1881 = vst [vmem:[%s3178_s30 + $0x120] sm:$0xff] %v1513_v19  ;;  %v1558_v7 = vadd.f32 %v2346_v59, %v1557_v13  ;;  %v1582_v8 = vmul.f32 %v1513_v19, %v1513_v19 }
 0x202   : > { %v1326_v5 = vadd.f32 %v1325_v60, %v1324_v45  ;;  %v1363_v6 = vrot.slane %v1362_v20, 1  ;;  %v2374_v11 = vpop.f32.mrb[22].mxu1  ;;  %v1809_v40 = vmul.f32 %v2371_v18, %v2371_v18  ;;  %v1596_v14 = vadd.f32 %v1595_v27, %v1581_v31 }
 0x203   : > { %v1823_v24 = vadd.f32 %v1822_v1, %v1808_v17  ;;  %1876 = vst [vmem:[%s3178_s30 + $0xf8] sm:$0xff] %v2374_v11  ;;  %v2352_v9 = vpop.f32.mrb[26].mxu0  ;;  %v1733_v56 = vpop.f32.mrb[23].mxu1  ;;  %v1786_v41 = vadd.f32 %v2371_v18, %v1785_v44  ;;  %v1583_v42 = vmul.f32 %v2349_v46, %v2349_v46  ;;  %v1559_v57 = vadd.f32 %v1558_v7, %v1513_v19 }
 0x204   : > { %v3229_v25 = vadd.f32 %v1326_v5, %v942_v35  ;;  %v1364_v21 = vadd.f32 %v1363_v6, %v1362_v20  ;;  %1890 = vst [vmem:[%s3178_s30 + $0x168] sm:$0xff] %v2352_v9  ;;  %1875 = vst [vmem:[%s3178_s30 + $0xf0] sm:$0xff] %v1733_v56  ;;  %v1523_v26 = vpop.f32.mrb[27].mxu0  ;;  %v1597_v29 = vadd.f32 %v1596_v14, %v1582_v8 }
 0x205   : > { %v1787_v58 = vadd.f32 %v1786_v41, %v1733_v56  ;;  %v1810_v34 = vmul.f32 %v1733_v56, %v1733_v56  ;;  %v1824_v36 = vadd.f32 %v1823_v24, %v1809_v40  ;;  %1889 = vst [vmem:[%s3178_s30 + $0x160] sm:$0xff] %v1523_v26  ;;  %v1560_v39 = vadd.f32 %v2349_v46, %v1559_v57 }
 0x206   : > { %v3234_v38 = vadd.f32 %v1364_v21, %v980_v22  ;;  %v1584_v43 = vmul.f32 %v1523_v26, %v1523_v26  ;;  %v2377_v47 = vpop.f32.mrb[24].mxu1  ;;  %v1811_v32 = vmul.f32 %v2374_v11, %v2374_v11  ;;  %v1598_v51 = vadd.f32 %v1597_v29, %v1583_v42 }
 0x207   : > { %v1825_v33 = vadd.f32 %v1824_v36, %v1810_v34  ;;  %1884 = vst [vmem:[%s3178_s30 + $0x138] sm:$0xff] %v2377_v47  ;;  %v2355_v48 = vpop.f32.mrb[28].mxu0  ;;  %v1743_v49 = vpop.f32.mrb[25].mxu1  ;;  %v1788_v52 = vadd.f32 %v2374_v11, %v1787_v58  ;;  %v1585_v54 = vmul.f32 %v2352_v9, %v2352_v9  ;;  %v1561_v55 = vadd.f32 %v1560_v39, %v1523_v26 }
 0x208   : > { %1898 = vst [vmem:[%s3178_s30 + $0x1a8] sm:$0xff] %v2355_v48  ;;  %v1812_v3 = vmul.f32 %v1743_v49, %v1743_v49  ;;  %1883 = vst [vmem:[%s3178_s30 + $0x130] sm:$0xff] %v1743_v49  ;;  %v1533_v59 = vpop.f32.mrb[29].mxu0  ;;  %v1599_v4 = vadd.f32 %v1598_v51, %v1584_v43  ;;  %v1813_v35 = vmul.f32 %v2377_v47, %v2377_v47 }
 0x209   : > { %v1789_v37 = vadd.f32 %v1788_v52, %v1743_v49  ;;  %v1826_v61 = vadd.f32 %v1825_v33, %v1811_v32  ;;  %v1586_v62 = vmul.f32 %v1533_v59, %v1533_v59  ;;  %1897 = vst [vmem:[%s3178_s30 + $0x1a0] sm:$0xff] %v1533_v59  ;;  %v1562_v53 = vadd.f32 %v2352_v9, %v1561_v55 }
 0x20a   : > { %v2380_v16 = vpop.f32.mrb[26].mxu1  ;;  %v1600_v23 = vadd.f32 %v1599_v4, %v1585_v54  ;;  %v1587_v63 = vmul.f32 %v2355_v48, %v2355_v48 }
 0x20b   : > { %v1827_v0 = vadd.f32 %v1826_v61, %v1812_v3  ;;  %1892 = vst [vmem:[%s3178_s30 + $0x178] sm:$0xff] %v2380_v16  ;;  %v2358_v2 = vpop.f32.mrb[30].mxu0  ;;  %v1753_v45 = vpop.f32.mrb[27].mxu1  ;;  %v1790_v15 = vadd.f32 %v2377_v47, %v1789_v37  ;;  %v1563_v10 = vadd.f32 %v1562_v53, %v1533_v59  ;;  %v1815_v20 = vmul.f32 %v2380_v16, %v2380_v16 }
 0x20c   : > { %1906 = vst [vmem:[%s3178_s30 + $0x1e8] sm:$0xff] %v2358_v2  ;;  %v1814_v18 = vmul.f32 %v1753_v45, %v1753_v45  ;;  %1891 = vst [vmem:[%s3178_s30 + $0x170] sm:$0xff] %v1753_v45  ;;  %v1543_v22 = vpop.f32.mrb[31].mxu0  ;;  %v1601_v12 = vadd.f32 %v1600_v23, %v1586_v62  ;;  %v1589_v1 = vmul.f32 %v2358_v2, %v2358_v2 }
 0x20d   : > { %v1791_v28 = vadd.f32 %v1790_v15, %v1753_v45  ;;  %v1828_v46 = vadd.f32 %v1827_v0, %v1813_v35  ;;  %v1588_v30 = vmul.f32 %v1543_v22, %v1543_v22  ;;  %1905 = vst [vmem:[%s3178_s30 + $0x1e0] sm:$0xff] %v1543_v22  ;;  %v1564_v50 = vadd.f32 %v2355_v48, %v1563_v10 }
 0x20e   : > { %v2383_v60 = vpop.f32.mrb[28].mxu1  ;;  %v1602_v13 = vadd.f32 %v1601_v12, %v1587_v63 }
 0x20f   : > { %v1829_v31 = vadd.f32 %v1828_v46, %v1814_v18  ;;  %1900 = vst [vmem:[%s3178_s30 + $0x1b8] sm:$0xff] %v2383_v60  ;;  %v1763_v19 = vpop.f32.mrb[29].mxu1  ;;  %v1792_v27 = vadd.f32 %v2380_v16, %v1791_v28  ;;  %v1565_v44 = vadd.f32 %v1564_v50, %v1543_v22  ;;  %v1817_v24 = vmul.f32 %v2383_v60, %v2383_v60 }
 0x210   : > { %v1816_v17 = vmul.f32 %v1763_v19, %v1763_v19  ;;  %1899 = vst [vmem:[%s3178_s30 + $0x1b0] sm:$0xff] %v1763_v19  ;;  %v1603_v5 = vadd.f32 %v1602_v13, %v1588_v30 }
 0x211   : > { %v1793_v6 = vadd.f32 %v1792_v27, %v1763_v19  ;;  %v1830_v7 = vadd.f32 %v1829_v31, %v1815_v20  ;;  %v1566_v8 = vadd.f32 %v2358_v2, %v1565_v44 }
 0x212   : > { %v2386_v11 = vpop.f32.mrb[30].mxu1  ;;  %v1604_v40 = vadd.f32 %v1603_v5, %v1589_v1 }
 0x213   : > { %v1831_v14 = vadd.f32 %v1830_v7, %v1816_v17  ;;  %1908 = vst [vmem:[%s3178_s30 + $0x1f8] sm:$0xff] %v2386_v11  ;;  %v1773_v9 = vpop.f32.mrb[31].mxu1  ;;  %v1794_v56 = vadd.f32 %v2383_v60, %v1793_v6  ;;  %v1567_v41 = vrot.slane %v1566_v8, 4  ;;  %v1819_v34 = vmul.f32 %v2386_v11, %v2386_v11 }
 0x214   : > { %v1818_v21 = vmul.f32 %v1773_v9, %v1773_v9  ;;  %1907 = vst [vmem:[%s3178_s30 + $0x1f0] sm:$0xff] %v1773_v9  ;;  %v1605_v42 = vrot.slane %v1604_v40, 4 }
 0x215   : > { %v1795_v57 = vadd.f32 %v1794_v56, %v1773_v9  ;;  %v1832_v26 = vadd.f32 %v1831_v14, %v1817_v24  ;;  %v1568_v29 = vadd.f32 %v1567_v41, %v1566_v8 }
 0x216   : > { %v1606_v58 = vadd.f32 %v1605_v42, %v1604_v40 }
 0x217   : > { %v1796_v36 = vadd.f32 %v2386_v11, %v1795_v57  ;;  %v1833_v39 = vadd.f32 %v1832_v26, %v1818_v21  ;;  %v1569_v43 = vrot.slane %v1568_v29, 2 }
 0x218   : > { %v1607_v47 = vrot.slane %v1606_v58, 2 }
 0x219   : > { %v1797_v32 = vrot.slane %v1796_v36, 4  ;;  %v1834_v33 = vadd.f32 %v1833_v39, %v1819_v34  ;;  %v1570_v51 = vadd.f32 %v1569_v43, %v1568_v29 }
 0x21a   : > { %v1608_v48 = vadd.f32 %v1607_v47, %v1606_v58 }
 0x21b   : > { %v1798_v49 = vadd.f32 %v1797_v32, %v1796_v36  ;;  %v1835_v52 = vrot.slane %v1834_v33, 4  ;;  %v1571_v54 = vrot.slane %v1570_v51, 1 }
 0x21c   : > { %v1609_v55 = vrot.slane %v1608_v48, 1 }
 0x21d   : > { %v1799_v3 = vrot.slane %v1798_v49, 2  ;;  %v1836_v59 = vadd.f32 %v1835_v52, %v1834_v33  ;;  %v1572_v4 = vadd.f32 %v1571_v54, %v1570_v51 }
 0x21e   : > { %v1610_v37 = vadd.f32 %v1609_v55, %v1608_v48 }
 0x21f   : > { %v1800_v61 = vadd.f32 %v1799_v3, %v1798_v49  ;;  %v1837_v62 = vrot.slane %v1836_v59, 2  ;;  %v1573_v53 = vadd.f32 %v1572_v4, %v3229_v25 }
 0x220   : > { %v1611_v16 = vadd.f32 %v1610_v37, %v3234_v38 }
 0x221   : > { %v1801_v35 = vrot.slane %v1800_v61, 1  ;;  %v1838_v0 = vadd.f32 %v1837_v62, %v1836_v59 }
 0x223   : > { %v1802_v23 = vadd.f32 %v1801_v35, %v1800_v61  ;;  %v1839_v2 = vrot.slane %v1838_v0, 1 }
 0x225   : > { %v1803_v45 = vadd.f32 %v1802_v23, %v1573_v53  ;;  %v1840_v15 = vadd.f32 %v1839_v2, %v1838_v0 }
 0x227   : > { %v1841_v63 = vadd.f32 %v1840_v15, %v1611_v16 }
 0x229   : > { %v1843_v10 = vsel %vm1842_vm7, %v1803_v45, %v1841_v63 }
 0x22a   : > { %1844 = vst [vmem:[%s413_s19] sm:$0x3] %v1843_v10 }
 0x22b PF: > { %s16_s22 = sadd.s32 1, %s2500_s22   ;;  %s3277_s18 = smov %s2492_s20 }
 0x22c   : > { %p13_p0 = scmp.ge.s32.totalorder %s16_s22, 6   ;;  %s3278_s19 = smov %s2496_s21 }
 0x22d   : > { %s3279_s20 = smov %s3282_s23  ;;  %s3280_s21 = smov %s3286_s24 }
 0x22e   :  { %15 = sbr.rel (!%p13_p0) target bundleno = 3 (0x3), region = 87 }

</bundles_post_ra>
